<compile_context>
chip_gen: v7x
topology: tpu7x:2x2x1
jax: 0.10.0
libtpu: 0.0.40
codegen_flags: <defaults>
</compile_context>

<pallas_src>
import functools
import math

import jax
import jax.numpy as jnp
from jax.experimental import pallas as pl
from jax.experimental.pallas import tpu as pltpu


CFG = dict(hidden=32, layers=2, heads=2, inter=64,
           vocab=100, max_pos=16, type_vocab=2)
CLS_PAD = 128          # lane-dense padded width of the fused dual-task classifier
NUM_LABELS_TASK1 = 3
NUM_LABELS_TASK2 = 5


# ----------------------------- in-kernel helpers -----------------------------

def _layernorm(x, gamma, beta, eps=1e-12):
    mu = jnp.mean(x, axis=-1, keepdims=True)
    var = jnp.mean((x - mu) ** 2, axis=-1, keepdims=True)
    return (x - mu) * jax.lax.rsqrt(var + eps) * gamma + beta


def _gelu(x):
    # tanh approximation of GELU (see TODO above re: exact erf form).
    c = math.sqrt(2.0 / math.pi)
    return 0.5 * x * (1.0 + jnp.tanh(c * (x + 0.044715 * x * x * x)))


# ------------------------------- fused kernel --------------------------------

def fused_forward_kernel(x_ref, bias_ref, emb_g_ref, emb_b_ref,
                         wqkv_ref, bqkv_ref, wo_ref, bo_ref,
                         ln1g_ref, ln1b_ref, w1_ref, b1_ref,
                         w2_ref, b2_ref, ln2g_ref, ln2b_ref,
                         clsw_ref, clsb_ref,
                         logits_ref, *, num_heads, num_layers):
    B, S, H = x_ref.shape
    dh = H // num_heads
    scale = dh ** -0.5
    T = B * S

    # Embedding LayerNorm on the flattened (tokens, hidden) slab.
    x = _layernorm(x_ref[...].reshape(T, H), emb_g_ref[...], emb_b_ref[...])

    # Additive attention-mask bias (B, 1, S); broadcast across heads in-kernel.
    bias = bias_ref[...]

    for l in range(num_layers):
        xb = x.astype(jnp.bfloat16)

        # ---- fused QKV: ONE lane-dense (T,H)@(H,3H) MXU matmul per layer ----
        qkv = (jnp.dot(xb, wqkv_ref[l], preferred_element_type=jnp.float32)
               + bqkv_ref[l])                                   # (T, 3H) f32

        # Head split via static lane slices; heads folded into the leading
        # (batch) axis -> (nh*B, S, dh) bf16 so attention is one batched
        # einsum pair for ALL heads (no per-head matmuls).
        def split_heads(base, scl=None):
            pieces = []
            for h in range(num_heads):
                blk = qkv[:, base + h * dh: base + (h + 1) * dh]   # (T, dh)
                if scl is not None:
                    blk = blk * scl
                pieces.append(blk.reshape(B, S, dh))
            return jnp.concatenate(pieces, axis=0).astype(jnp.bfloat16)

        q = split_heads(0, scale)           # 1/sqrt(dh) folded into q here
        k = split_heads(H)
        v = split_heads(2 * H)

        # Scores / softmax / context for all heads at once; softmax in f32.
        s = jnp.einsum('bqd,bkd->bqk', q, k,
                       preferred_element_type=jnp.float32)       # (nh*B, S, S)
        s = (s.reshape(num_heads, B, S, S) + bias[None]).reshape(
            num_heads * B, S, S)
        s = s - jnp.max(s, axis=-1, keepdims=True)
        p = jnp.exp(s)
        p = p * pl.reciprocal(jnp.sum(p, axis=-1, keepdims=True), approx=True)
        ctx = jnp.einsum('bqk,bkd->bqd', p.astype(jnp.bfloat16), v,
                         preferred_element_type=jnp.float32)     # (nh*B, S, dh)

        # ---- output projection: heads re-concatenated along lanes -> (T,H),
        # ONE full-depth (T,H)@(H,H) MXU matmul (no per-head accumulation). ----
        ctx_flat = jnp.concatenate(
            [ctx[h * B:(h + 1) * B].reshape(T, dh) for h in range(num_heads)],
            axis=-1).astype(jnp.bfloat16)                        # (T, H)
        attn = (jnp.dot(ctx_flat, wo_ref[l],
                        preferred_element_type=jnp.float32) + bo_ref[l])

        h1 = _layernorm(x + attn, ln1g_ref[l], ln1b_ref[l])

        # FFN (GELU on the full (T, I) slab in one pass -> streaming EUP).
        ffn = jnp.dot(h1.astype(jnp.bfloat16), w1_ref[l],
                      preferred_element_type=jnp.float32) + b1_ref[l]
        ffn = _gelu(ffn)
        ffn = jnp.dot(ffn.astype(jnp.bfloat16), w2_ref[l],
                      preferred_element_type=jnp.float32) + b2_ref[l]

        x = _layernorm(h1 + ffn, ln2g_ref[l], ln2b_ref[l])

    # [CLS] token per batch -> fused (task1 | task2 | zero-pad) classifier.
    # Output is a lane-dense (B, 128) store; task slices happen outside.
    cls = x.reshape(B, S, H)[:, 0, :]                            # (B, H)
    logits_ref[...] = (jnp.dot(cls.astype(jnp.bfloat16), clsw_ref[...],
                               preferred_element_type=jnp.float32)
                       + clsb_ref[...])


# ----------------------------- model parameters ------------------------------

def init_params(key, cfg, num_labels_task1, num_labels_task2):
    H, I = cfg['hidden'], cfg['inter']
    L = cfg['layers']
    keys = iter(jax.random.split(key, 256))

    def w(shape, scale=0.02):
        return (scale * jax.random.normal(next(keys), shape)).astype(jnp.float32)

    wqkv_l, wo_l, w1_l, w2_l = [], [], [], []
    for _ in range(L):
        wq, wk, wv = w((H, H)), w((H, H)), w((H, H))
        wqkv_l.append(jnp.concatenate([wq, wk, wv], axis=-1))   # (H, 3H)
        wo_l.append(w((H, H)))                                  # (H, H)
        w1_l.append(w((H, I)))
        w2_l.append(w((I, H)))

    n1, n2 = num_labels_task1, num_labels_task2
    cls_w = jnp.zeros((H, CLS_PAD), jnp.float32)
    cls_w = cls_w.at[:, :n1].set(w((H, n1))).at[:, n1:n1 + n2].set(w((H, n2)))

    params = {
        'word_emb': w((cfg['vocab'], H)),
        'pos_emb': w((cfg['max_pos'], H)),
        'type_emb': w((cfg['type_vocab'], H)),
        'emb_ln_g': jnp.ones((1, H), jnp.float32),
        'emb_ln_b': jnp.zeros((1, H), jnp.float32),
        # Per-layer params stacked along a leading layer axis; MXU operands in
        # bf16 (f32 accumulation inside the kernel); biases lane-dense rows.
        'wqkv': jnp.stack(wqkv_l).astype(jnp.bfloat16),   # (L, H, 3H)
        'bqkv': jnp.zeros((L, 1, 3 * H), jnp.float32),    # (L, 1, 3H)
        'wo':   jnp.stack(wo_l).astype(jnp.bfloat16),     # (L, H, H)
        'bo':   jnp.zeros((L, 1, H), jnp.float32),
        'ln1_g': jnp.ones((L, 1, H), jnp.float32),
        'ln1_b': jnp.zeros((L, 1, H), jnp.float32),
        'w1': jnp.stack(w1_l).astype(jnp.bfloat16),       # (L, H, I)
        'b1': jnp.zeros((L, 1, I), jnp.float32),
        'w2': jnp.stack(w2_l).astype(jnp.bfloat16),       # (L, I, H)
        'b2': jnp.zeros((L, 1, H), jnp.float32),
        'ln2_g': jnp.ones((L, 1, H), jnp.float32),
        'ln2_b': jnp.zeros((L, 1, H), jnp.float32),
        'cls_w': cls_w.astype(jnp.bfloat16),              # (H, 128) fused + padded
        'cls_b': jnp.zeros((1, CLS_PAD), jnp.float32),
    }
    return params


# --------------------------------- forward -----------------------------------

@jax.jit
def encode_and_classify(params, input_ids, attention_mask):
    """One fused Pallas call: encoder once, both task heads (padded to 128)."""
    B, S = input_ids.shape
    H, I, L, nh = CFG['hidden'], CFG['inter'], CFG['layers'], CFG['heads']

    # Embedding lookup (gather glue) stays in plain JAX.
    pos_ids = jnp.arange(S)
    x = (params['word_emb'][input_ids]
         + params['pos_emb'][pos_ids][None, :, :]
         + params['type_emb'][0][None, None, :]).astype(jnp.float32)

    # Additive attention-mask bias (B, 1, S); broadcast across heads in-kernel.
    bias = ((1.0 - attention_mask.astype(jnp.float32)) * -10000.0)[:, None, :]

    args = (x, bias, params['emb_ln_g'], params['emb_ln_b'],
            params['wqkv'], params['bqkv'], params['wo'], params['bo'],
            params['ln1_g'], params['ln1_b'], params['w1'], params['b1'],
            params['w2'], params['b2'], params['ln2_g'], params['ln2_b'],
            params['cls_w'], params['cls_b'])

    T = B * S
    flops = (L * (8 * T * H * H + 4 * B * S * S * H + 4 * T * H * I)
             + 2 * B * H * CLS_PAD)
    transcendentals = L * (nh * B * S * S + T * I + nh * B * S + 2 * T) + T
    bytes_accessed = (sum(int(a.size) * a.dtype.itemsize for a in args)
                      + B * CLS_PAD * 4)

    # Explicit scoped-VMEM limit (defaults: 16 MiB v5e / 32 MiB v6e,v7x);
    # generous headroom for activations, clamped well below v7x physical.
    vmem_limit = int(min(48 * 1024 * 1024,
                         max(32 * 1024 * 1024, 4 * bytes_accessed)))

    vmem = pl.BlockSpec(memory_space=pltpu.MemorySpace.VMEM)
    return pl.pallas_call(
        functools.partial(fused_forward_kernel, num_heads=nh, num_layers=L),
        out_shape=jax.ShapeDtypeStruct((B, CLS_PAD), jnp.float32),
        in_specs=[vmem] * len(args),
        out_specs=vmem,
        compiler_params=pltpu.CompilerParams(vmem_limit_bytes=vmem_limit),
        cost_estimate=pl.CostEstimate(flops=flops,
                                      transcendentals=transcendentals,
                                      bytes_accessed=bytes_accessed),
    )(*args)


def multi_task_forward(params, input_ids, attention_mask, task='task1',
                       num_labels_task1=NUM_LABELS_TASK1,
                       num_labels_task2=NUM_LABELS_TASK2):
    """API parity with the torch module (single-task logits)."""
    padded = encode_and_classify(params, input_ids, attention_mask)
    if task == 'task1':
        return padded[:, :num_labels_task1]
    return padded[:, num_labels_task1:num_labels_task1 + num_labels_task2]


# ----------------------------------- main -------------------------------------

if __name__ == "__main__":
    key = jax.random.PRNGKey(0)
    k_param, k_ids = jax.random.split(key)

    n1, n2 = NUM_LABELS_TASK1, NUM_LABELS_TASK2
    params = init_params(k_param, CFG, n1, n2)

    B, S = 2, 8
    input_ids = jax.random.randint(k_ids, (B, S), 0, CFG['vocab'], dtype=jnp.int32)
    attention_mask = jnp.ones((B, S), dtype=jnp.int32).at[1, 6:].set(0)

    # Encoder runs ONCE; both task heads come from the single fused, lane-dense
    # (B, 128) classifier output and are sliced here.
    padded_logits = encode_and_classify(params, input_ids, attention_mask)
    jax.block_until_ready(padded_logits)
    logits_t1 = padded_logits[:, :n1]
    logits_t2 = padded_logits[:, n1:n1 + n2]

    assert logits_t1.shape == (B, n1)
    assert logits_t2.shape == (B, n2)
    print("KERNEL_OK")
</pallas_src>

<mosaic_0001>
module attributes {stable_mosaic.version = 11 : i64} {
  func.func @fused_forward_kernel(%arg0: memref<2x8x32xf32, #tpu.memory_space<vmem>>, %arg1: memref<2x1x8xf32, #tpu.memory_space<vmem>>, %arg2: memref<1x32xf32, #tpu.memory_space<vmem>>, %arg3: memref<1x32xf32, #tpu.memory_space<vmem>>, %arg4: memref<2x32x96xbf16, #tpu.memory_space<vmem>>, %arg5: memref<2x1x96xf32, #tpu.memory_space<vmem>>, %arg6: memref<2x32x32xbf16, #tpu.memory_space<vmem>>, %arg7: memref<2x1x32xf32, #tpu.memory_space<vmem>>, %arg8: memref<2x1x32xf32, #tpu.memory_space<vmem>>, %arg9: memref<2x1x32xf32, #tpu.memory_space<vmem>>, %arg10: memref<2x32x64xbf16, #tpu.memory_space<vmem>>, %arg11: memref<2x1x64xf32, #tpu.memory_space<vmem>>, %arg12: memref<2x64x32xbf16, #tpu.memory_space<vmem>>, %arg13: memref<2x1x32xf32, #tpu.memory_space<vmem>>, %arg14: memref<2x1x32xf32, #tpu.memory_space<vmem>>, %arg15: memref<2x1x32xf32, #tpu.memory_space<vmem>>, %arg16: memref<32x128xbf16, #tpu.memory_space<vmem>>, %arg17: memref<1x128xf32, #tpu.memory_space<vmem>>, %arg18: memref<2x128xf32, #tpu.memory_space<vmem>>) attributes {dimension_semantics = [], scalar_prefetch = 0 : i64, scratch_operands = 0 : i64, tpu.core_type = #tpu.core_type<tc>} {
    %c0 = arith.constant 0 : index
    %c0_0 = arith.constant 0 : index
    %c0_1 = arith.constant 0 : index
    %0 = vector.load %arg0[%c0, %c0_0, %c0_1] : memref<2x8x32xf32, #tpu.memory_space<vmem>>, vector<2x8x32xf32>
    %1 = vector.shape_cast %0 : vector<2x8x32xf32> to vector<16x32xf32>
    %c0_2 = arith.constant 0 : index
    %c0_3 = arith.constant 0 : index
    %2 = vector.load %arg2[%c0_2, %c0_3] : memref<1x32xf32, #tpu.memory_space<vmem>>, vector<1x32xf32>
    %c0_4 = arith.constant 0 : index
    %c0_5 = arith.constant 0 : index
    %3 = vector.load %arg3[%c0_4, %c0_5] : memref<1x32xf32, #tpu.memory_space<vmem>>, vector<1x32xf32>
    %cst = arith.constant dense<0.000000e+00> : vector<16xf32>
    %4 = vector.multi_reduction <add>, %1, %cst [1] : vector<16x32xf32> to vector<16xf32>
    %5 = vector.shape_cast %4 : vector<16xf32> to vector<16x1xf32>
    %cst_6 = arith.constant 3.200000e+01 : f32
    %6 = vector.broadcast %cst_6 : f32 to vector<16x1xf32>
    %7 = arith.divf %5, %6 : vector<16x1xf32>
    %8 = vector.broadcast %7 : vector<16x1xf32> to vector<16x32xf32>
    %9 = arith.subf %1, %8 : vector<16x32xf32>
    %10 = arith.mulf %9, %9 : vector<16x32xf32>
    %cst_7 = arith.constant dense<0.000000e+00> : vector<16xf32>
    %11 = vector.multi_reduction <add>, %10, %cst_7 [1] : vector<16x32xf32> to vector<16xf32>
    %12 = vector.shape_cast %11 : vector<16xf32> to vector<16x1xf32>
    %cst_8 = arith.constant 3.200000e+01 : f32
    %13 = vector.broadcast %cst_8 : f32 to vector<16x1xf32>
    %14 = arith.divf %12, %13 : vector<16x1xf32>
    %15 = vector.broadcast %7 : vector<16x1xf32> to vector<16x32xf32>
    %16 = arith.subf %1, %15 : vector<16x32xf32>
    %cst_9 = arith.constant 9.99999996E-13 : f32
    %17 = vector.broadcast %cst_9 : f32 to vector<16x1xf32>
    %18 = arith.addf %14, %17 : vector<16x1xf32>
    %19 = math.rsqrt %18 : vector<16x1xf32>
    %20 = vector.broadcast %19 : vector<16x1xf32> to vector<16x32xf32>
    %21 = arith.mulf %16, %20 : vector<16x32xf32>
    %22 = vector.broadcast %2 : vector<1x32xf32> to vector<16x32xf32>
    %23 = arith.mulf %21, %22 : vector<16x32xf32>
    %24 = vector.broadcast %3 : vector<1x32xf32> to vector<16x32xf32>
    %25 = arith.addf %23, %24 : vector<16x32xf32>
    %c0_10 = arith.constant 0 : index
    %c0_11 = arith.constant 0 : index
    %c0_12 = arith.constant 0 : index
    %26 = vector.load %arg1[%c0_10, %c0_11, %c0_12] : memref<2x1x8xf32, #tpu.memory_space<vmem>>, vector<2x1x8xf32>
    %27 = arith.truncf %25 : vector<16x32xf32> to vector<16x32xbf16>
    %c0_13 = arith.constant 0 : index
    %c0_14 = arith.constant 0 : index
    %c0_15 = arith.constant 0 : index
    %28 = vector.load %arg4[%c0_13, %c0_14, %c0_15] : memref<2x32x96xbf16, #tpu.memory_space<vmem>>, vector<1x32x96xbf16>
    %29 = vector.shape_cast %28 : vector<1x32x96xbf16> to vector<32x96xbf16>
    %cst_16 = arith.constant dense<0.000000e+00> : vector<16x96xf32>
    %30 = tpu.matmul %27, %29, %cst_16 {dimension_numbers = #tpu.dot_dimension_numbers<[1], [0], [0], [1], [0, 0, 1, 1], [], []>} : vector<16x32xbf16>, vector<32x96xbf16>, vector<16x96xf32> -> vector<16x96xf32>
    %c0_17 = arith.constant 0 : index
    %c0_18 = arith.constant 0 : index
    %c0_19 = arith.constant 0 : index
    %31 = vector.load %arg5[%c0_17, %c0_18, %c0_19] : memref<2x1x96xf32, #tpu.memory_space<vmem>>, vector<1x1x96xf32>
    %32 = vector.shape_cast %31 : vector<1x1x96xf32> to vector<1x96xf32>
    %33 = vector.broadcast %32 : vector<1x96xf32> to vector<16x96xf32>
    %34 = arith.addf %30, %33 : vector<16x96xf32>
    %35 = vector.extract_strided_slice %34 {offsets = [0, 0], sizes = [16, 16], strides = [1, 1]} : vector<16x96xf32> to vector<16x16xf32>
    %cst_20 = arith.constant 2.500000e-01 : f32
    %36 = vector.broadcast %cst_20 : f32 to vector<16x16xf32>
    %37 = arith.mulf %35, %36 : vector<16x16xf32>
    %38 = vector.shape_cast %37 : vector<16x16xf32> to vector<2x8x16xf32>
    %39 = vector.extract_strided_slice %34 {offsets = [0, 16], sizes = [16, 16], strides = [1, 1]} : vector<16x96xf32> to vector<16x16xf32>
    %cst_21 = arith.constant 2.500000e-01 : f32
    %40 = vector.broadcast %cst_21 : f32 to vector<16x16xf32>
    %41 = arith.mulf %39, %40 : vector<16x16xf32>
    %42 = vector.shape_cast %41 : vector<16x16xf32> to vector<2x8x16xf32>
    %43 = tpu.concatenate %38, %42 in 0 : vector<2x8x16xf32>, vector<2x8x16xf32> -> vector<4x8x16xf32>
    %44 = arith.truncf %43 : vector<4x8x16xf32> to vector<4x8x16xbf16>
    %45 = vector.extract_strided_slice %34 {offsets = [0, 32], sizes = [16, 16], strides = [1, 1]} : vector<16x96xf32> to vector<16x16xf32>
    %46 = vector.shape_cast %45 : vector<16x16xf32> to vector<2x8x16xf32>
    %47 = vector.extract_strided_slice %34 {offsets = [0, 48], sizes = [16, 16], strides = [1, 1]} : vector<16x96xf32> to vector<16x16xf32>
    %48 = vector.shape_cast %47 : vector<16x16xf32> to vector<2x8x16xf32>
    %49 = tpu.concatenate %46, %48 in 0 : vector<2x8x16xf32>, vector<2x8x16xf32> -> vector<4x8x16xf32>
    %50 = arith.truncf %49 : vector<4x8x16xf32> to vector<4x8x16xbf16>
    %51 = vector.extract_strided_slice %34 {offsets = [0, 64], sizes = [16, 16], strides = [1, 1]} : vector<16x96xf32> to vector<16x16xf32>
    %52 = vector.shape_cast %51 : vector<16x16xf32> to vector<2x8x16xf32>
    %53 = vector.extract_strided_slice %34 {offsets = [0, 80], sizes = [16, 16], strides = [1, 1]} : vector<16x96xf32> to vector<16x16xf32>
    %54 = vector.shape_cast %53 : vector<16x16xf32> to vector<2x8x16xf32>
    %55 = tpu.concatenate %52, %54 in 0 : vector<2x8x16xf32>, vector<2x8x16xf32> -> vector<4x8x16xf32>
    %56 = arith.truncf %55 : vector<4x8x16xf32> to vector<4x8x16xbf16>
    "tpu.trace_start"() <{level = 10 : i32, message = "bqd,bkd->bqk"}> : () -> ()
    %cst_22 = arith.constant dense<0.000000e+00> : vector<4x8x8xf32>
    %57 = tpu.matmul %44, %50, %cst_22 {dimension_numbers = #tpu.dot_dimension_numbers<[2], [2], [1], [1], [0, 0, 0, 1, 1, 1], [0], [0]>} : vector<4x8x16xbf16>, vector<4x8x16xbf16>, vector<4x8x8xf32> -> vector<4x8x8xf32>
    "tpu.trace_stop"() : () -> ()
    %58 = vector.shape_cast %57 : vector<4x8x8xf32> to vector<2x2x8x8xf32>
    %59 = vector.shape_cast %26 : vector<2x1x8xf32> to vector<1x2x1x8xf32>
    %60 = vector.broadcast %59 : vector<1x2x1x8xf32> to vector<2x2x8x8xf32>
    %61 = arith.addf %58, %60 : vector<2x2x8x8xf32>
    %62 = vector.shape_cast %61 : vector<2x2x8x8xf32> to vector<4x8x8xf32>
    %cst_23 = arith.constant dense<0xFF800000> : vector<4x8xf32>
    %63 = vector.multi_reduction <maximumf>, %62, %cst_23 [2] : vector<4x8x8xf32> to vector<4x8xf32>
    %64 = vector.shape_cast %63 : vector<4x8xf32> to vector<4x8x1xf32>
    %65 = vector.broadcast %64 : vector<4x8x1xf32> to vector<4x8x8xf32>
    %66 = arith.subf %62, %65 : vector<4x8x8xf32>
    %67 = math.exp %66 : vector<4x8x8xf32>
    %cst_24 = arith.constant dense<0.000000e+00> : vector<4x8xf32>
    %68 = vector.multi_reduction <add>, %67, %cst_24 [2] : vector<4x8x8xf32> to vector<4x8xf32>
    %69 = vector.shape_cast %68 : vector<4x8xf32> to vector<4x8x1xf32>
    %70 = tpu.reciprocal %69 {approx = true} : vector<4x8x1xf32> -> vector<4x8x1xf32>
    %71 = vector.broadcast %70 : vector<4x8x1xf32> to vector<4x8x8xf32>
    %72 = arith.mulf %67, %71 : vector<4x8x8xf32>
    %73 = arith.truncf %72 : vector<4x8x8xf32> to vector<4x8x8xbf16>
    "tpu.trace_start"() <{level = 10 : i32, message = "bqk,bkd->bqd"}> : () -> ()
    %cst_25 = arith.constant dense<0.000000e+00> : vector<4x8x16xf32>
    %74 = tpu.matmul %73, %56, %cst_25 {dimension_numbers = #tpu.dot_dimension_numbers<[2], [1], [1], [2], [0, 0, 0, 1, 1, 2], [0], [0]>} : vector<4x8x8xbf16>, vector<4x8x16xbf16>, vector<4x8x16xf32> -> vector<4x8x16xf32>
    "tpu.trace_stop"() : () -> ()
    %75 = vector.extract_strided_slice %74 {offsets = [0, 0, 0], sizes = [2, 8, 16], strides = [1, 1, 1]} : vector<4x8x16xf32> to vector<2x8x16xf32>
    %76 = vector.shape_cast %75 : vector<2x8x16xf32> to vector<16x16xf32>
    %77 = vector.extract_strided_slice %74 {offsets = [2, 0, 0], sizes = [2, 8, 16], strides = [1, 1, 1]} : vector<4x8x16xf32> to vector<2x8x16xf32>
    %78 = vector.shape_cast %77 : vector<2x8x16xf32> to vector<16x16xf32>
    %79 = tpu.concatenate %76, %78 in 1 : vector<16x16xf32>, vector<16x16xf32> -> vector<16x32xf32>
    %80 = arith.truncf %79 : vector<16x32xf32> to vector<16x32xbf16>
    %c0_26 = arith.constant 0 : index
    %c0_27 = arith.constant 0 : index
    %c0_28 = arith.constant 0 : index
    %81 = vector.load %arg6[%c0_26, %c0_27, %c0_28] : memref<2x32x32xbf16, #tpu.memory_space<vmem>>, vector<1x32x32xbf16>
    %82 = vector.shape_cast %81 : vector<1x32x32xbf16> to vector<32x32xbf16>
    %cst_29 = arith.constant dense<0.000000e+00> : vector<16x32xf32>
    %83 = tpu.matmul %80, %82, %cst_29 {dimension_numbers = #tpu.dot_dimension_numbers<[1], [0], [0], [1], [0, 0, 1, 1], [], []>} : vector<16x32xbf16>, vector<32x32xbf16>, vector<16x32xf32> -> vector<16x32xf32>
    %c0_30 = arith.constant 0 : index
    %c0_31 = arith.constant 0 : index
    %c0_32 = arith.constant 0 : index
    %84 = vector.load %arg7[%c0_30, %c0_31, %c0_32] : memref<2x1x32xf32, #tpu.memory_space<vmem>>, vector<1x1x32xf32>
    %85 = vector.shape_cast %84 : vector<1x1x32xf32> to vector<1x32xf32>
    %86 = vector.broadcast %85 : vector<1x32xf32> to vector<16x32xf32>
    %87 = arith.addf %83, %86 : vector<16x32xf32>
    %88 = arith.addf %25, %87 : vector<16x32xf32>
    %c0_33 = arith.constant 0 : index
    %c0_34 = arith.constant 0 : index
    %c0_35 = arith.constant 0 : index
    %89 = vector.load %arg8[%c0_33, %c0_34, %c0_35] : memref<2x1x32xf32, #tpu.memory_space<vmem>>, vector<1x1x32xf32>
    %90 = vector.shape_cast %89 : vector<1x1x32xf32> to vector<1x32xf32>
    %c0_36 = arith.constant 0 : index
    %c0_37 = arith.constant 0 : index
    %c0_38 = arith.constant 0 : index
    %91 = vector.load %arg9[%c0_36, %c0_37, %c0_38] : memref<2x1x32xf32, #tpu.memory_space<vmem>>, vector<1x1x32xf32>
    %92 = vector.shape_cast %91 : vector<1x1x32xf32> to vector<1x32xf32>
    %cst_39 = arith.constant dense<0.000000e+00> : vector<16xf32>
    %93 = vector.multi_reduction <add>, %88, %cst_39 [1] : vector<16x32xf32> to vector<16xf32>
    %94 = vector.shape_cast %93 : vector<16xf32> to vector<16x1xf32>
    %cst_40 = arith.constant 3.200000e+01 : f32
    %95 = vector.broadcast %cst_40 : f32 to vector<16x1xf32>
    %96 = arith.divf %94, %95 : vector<16x1xf32>
    %97 = vector.broadcast %96 : vector<16x1xf32> to vector<16x32xf32>
    %98 = arith.subf %88, %97 : vector<16x32xf32>
    %99 = arith.mulf %98, %98 : vector<16x32xf32>
    %cst_41 = arith.constant dense<0.000000e+00> : vector<16xf32>
    %100 = vector.multi_reduction <add>, %99, %cst_41 [1] : vector<16x32xf32> to vector<16xf32>
    %101 = vector.shape_cast %100 : vector<16xf32> to vector<16x1xf32>
    %cst_42 = arith.constant 3.200000e+01 : f32
    %102 = vector.broadcast %cst_42 : f32 to vector<16x1xf32>
    %103 = arith.divf %101, %102 : vector<16x1xf32>
    %104 = vector.broadcast %96 : vector<16x1xf32> to vector<16x32xf32>
    %105 = arith.subf %88, %104 : vector<16x32xf32>
    %cst_43 = arith.constant 9.99999996E-13 : f32
    %106 = vector.broadcast %cst_43 : f32 to vector<16x1xf32>
    %107 = arith.addf %103, %106 : vector<16x1xf32>
    %108 = math.rsqrt %107 : vector<16x1xf32>
    %109 = vector.broadcast %108 : vector<16x1xf32> to vector<16x32xf32>
    %110 = arith.mulf %105, %109 : vector<16x32xf32>
    %111 = vector.broadcast %90 : vector<1x32xf32> to vector<16x32xf32>
    %112 = arith.mulf %110, %111 : vector<16x32xf32>
    %113 = vector.broadcast %92 : vector<1x32xf32> to vector<16x32xf32>
    %114 = arith.addf %112, %113 : vector<16x32xf32>
    %115 = arith.truncf %114 : vector<16x32xf32> to vector<16x32xbf16>
    %c0_44 = arith.constant 0 : index
    %c0_45 = arith.constant 0 : index
    %c0_46 = arith.constant 0 : index
    %116 = vector.load %arg10[%c0_44, %c0_45, %c0_46] : memref<2x32x64xbf16, #tpu.memory_space<vmem>>, vector<1x32x64xbf16>
    %117 = vector.shape_cast %116 : vector<1x32x64xbf16> to vector<32x64xbf16>
    %cst_47 = arith.constant dense<0.000000e+00> : vector<16x64xf32>
    %118 = tpu.matmul %115, %117, %cst_47 {dimension_numbers = #tpu.dot_dimension_numbers<[1], [0], [0], [1], [0, 0, 1, 1], [], []>} : vector<16x32xbf16>, vector<32x64xbf16>, vector<16x64xf32> -> vector<16x64xf32>
    %c0_48 = arith.constant 0 : index
    %c0_49 = arith.constant 0 : index
    %c0_50 = arith.constant 0 : index
    %119 = vector.load %arg11[%c0_48, %c0_49, %c0_50] : memref<2x1x64xf32, #tpu.memory_space<vmem>>, vector<1x1x64xf32>
    %120 = vector.shape_cast %119 : vector<1x1x64xf32> to vector<1x64xf32>
    %121 = vector.broadcast %120 : vector<1x64xf32> to vector<16x64xf32>
    %122 = arith.addf %118, %121 : vector<16x64xf32>
    %cst_51 = arith.constant 5.000000e-01 : f32
    %123 = vector.broadcast %cst_51 : f32 to vector<16x64xf32>
    %124 = arith.mulf %123, %122 : vector<16x64xf32>
    %cst_52 = arith.constant 4.471500e-02 : f32
    %125 = vector.broadcast %cst_52 : f32 to vector<16x64xf32>
    %126 = arith.mulf %125, %122 : vector<16x64xf32>
    %127 = arith.mulf %126, %122 : vector<16x64xf32>
    %128 = arith.mulf %127, %122 : vector<16x64xf32>
    %129 = arith.addf %122, %128 : vector<16x64xf32>
    %cst_53 = arith.constant 0.797884583 : f32
    %130 = vector.broadcast %cst_53 : f32 to vector<16x64xf32>
    %131 = arith.mulf %130, %129 : vector<16x64xf32>
    %132 = math.tanh %131 : vector<16x64xf32>
    %cst_54 = arith.constant 1.000000e+00 : f32
    %133 = vector.broadcast %cst_54 : f32 to vector<16x64xf32>
    %134 = arith.addf %133, %132 : vector<16x64xf32>
    %135 = arith.mulf %124, %134 : vector<16x64xf32>
    %136 = arith.truncf %135 : vector<16x64xf32> to vector<16x64xbf16>
    %c0_55 = arith.constant 0 : index
    %c0_56 = arith.constant 0 : index
    %c0_57 = arith.constant 0 : index
    %137 = vector.load %arg12[%c0_55, %c0_56, %c0_57] : memref<2x64x32xbf16, #tpu.memory_space<vmem>>, vector<1x64x32xbf16>
    %138 = vector.shape_cast %137 : vector<1x64x32xbf16> to vector<64x32xbf16>
    %cst_58 = arith.constant dense<0.000000e+00> : vector<16x32xf32>
    %139 = tpu.matmul %136, %138, %cst_58 {dimension_numbers = #tpu.dot_dimension_numbers<[1], [0], [0], [1], [0, 0, 1, 1], [], []>} : vector<16x64xbf16>, vector<64x32xbf16>, vector<16x32xf32> -> vector<16x32xf32>
    %c0_59 = arith.constant 0 : index
    %c0_60 = arith.constant 0 : index
    %c0_61 = arith.constant 0 : index
    %140 = vector.load %arg13[%c0_59, %c0_60, %c0_61] : memref<2x1x32xf32, #tpu.memory_space<vmem>>, vector<1x1x32xf32>
    %141 = vector.shape_cast %140 : vector<1x1x32xf32> to vector<1x32xf32>
    %142 = vector.broadcast %141 : vector<1x32xf32> to vector<16x32xf32>
    %143 = arith.addf %139, %142 : vector<16x32xf32>
    %144 = arith.addf %114, %143 : vector<16x32xf32>
    %c0_62 = arith.constant 0 : index
    %c0_63 = arith.constant 0 : index
    %c0_64 = arith.constant 0 : index
    %145 = vector.load %arg14[%c0_62, %c0_63, %c0_64] : memref<2x1x32xf32, #tpu.memory_space<vmem>>, vector<1x1x32xf32>
    %146 = vector.shape_cast %145 : vector<1x1x32xf32> to vector<1x32xf32>
    %c0_65 = arith.constant 0 : index
    %c0_66 = arith.constant 0 : index
    %c0_67 = arith.constant 0 : index
    %147 = vector.load %arg15[%c0_65, %c0_66, %c0_67] : memref<2x1x32xf32, #tpu.memory_space<vmem>>, vector<1x1x32xf32>
    %148 = vector.shape_cast %147 : vector<1x1x32xf32> to vector<1x32xf32>
    %cst_68 = arith.constant dense<0.000000e+00> : vector<16xf32>
    %149 = vector.multi_reduction <add>, %144, %cst_68 [1] : vector<16x32xf32> to vector<16xf32>
    %150 = vector.shape_cast %149 : vector<16xf32> to vector<16x1xf32>
    %cst_69 = arith.constant 3.200000e+01 : f32
    %151 = vector.broadcast %cst_69 : f32 to vector<16x1xf32>
    %152 = arith.divf %150, %151 : vector<16x1xf32>
    %153 = vector.broadcast %152 : vector<16x1xf32> to vector<16x32xf32>
    %154 = arith.subf %144, %153 : vector<16x32xf32>
    %155 = arith.mulf %154, %154 : vector<16x32xf32>
    %cst_70 = arith.constant dense<0.000000e+00> : vector<16xf32>
    %156 = vector.multi_reduction <add>, %155, %cst_70 [1] : vector<16x32xf32> to vector<16xf32>
    %157 = vector.shape_cast %156 : vector<16xf32> to vector<16x1xf32>
    %cst_71 = arith.constant 3.200000e+01 : f32
    %158 = vector.broadcast %cst_71 : f32 to vector<16x1xf32>
    %159 = arith.divf %157, %158 : vector<16x1xf32>
    %160 = vector.broadcast %152 : vector<16x1xf32> to vector<16x32xf32>
    %161 = arith.subf %144, %160 : vector<16x32xf32>
    %cst_72 = arith.constant 9.99999996E-13 : f32
    %162 = vector.broadcast %cst_72 : f32 to vector<16x1xf32>
    %163 = arith.addf %159, %162 : vector<16x1xf32>
    %164 = math.rsqrt %163 : vector<16x1xf32>
    %165 = vector.broadcast %164 : vector<16x1xf32> to vector<16x32xf32>
    %166 = arith.mulf %161, %165 : vector<16x32xf32>
    %167 = vector.broadcast %146 : vector<1x32xf32> to vector<16x32xf32>
    %168 = arith.mulf %166, %167 : vector<16x32xf32>
    %169 = vector.broadcast %148 : vector<1x32xf32> to vector<16x32xf32>
    %170 = arith.addf %168, %169 : vector<16x32xf32>
    %171 = arith.truncf %170 : vector<16x32xf32> to vector<16x32xbf16>
    %c1 = arith.constant 1 : index
    %c0_73 = arith.constant 0 : index
    %c0_74 = arith.constant 0 : index
    %172 = vector.load %arg4[%c1, %c0_73, %c0_74] : memref<2x32x96xbf16, #tpu.memory_space<vmem>>, vector<1x32x96xbf16>
    %173 = vector.shape_cast %172 : vector<1x32x96xbf16> to vector<32x96xbf16>
    %cst_75 = arith.constant dense<0.000000e+00> : vector<16x96xf32>
    %174 = tpu.matmul %171, %173, %cst_75 {dimension_numbers = #tpu.dot_dimension_numbers<[1], [0], [0], [1], [0, 0, 1, 1], [], []>} : vector<16x32xbf16>, vector<32x96xbf16>, vector<16x96xf32> -> vector<16x96xf32>
    %c1_76 = arith.constant 1 : index
    %c0_77 = arith.constant 0 : index
    %c0_78 = arith.constant 0 : index
    %175 = vector.load %arg5[%c1_76, %c0_77, %c0_78] : memref<2x1x96xf32, #tpu.memory_space<vmem>>, vector<1x1x96xf32>
    %176 = vector.shape_cast %175 : vector<1x1x96xf32> to vector<1x96xf32>
    %177 = vector.broadcast %176 : vector<1x96xf32> to vector<16x96xf32>
    %178 = arith.addf %174, %177 : vector<16x96xf32>
    %179 = vector.extract_strided_slice %178 {offsets = [0, 0], sizes = [16, 16], strides = [1, 1]} : vector<16x96xf32> to vector<16x16xf32>
    %cst_79 = arith.constant 2.500000e-01 : f32
    %180 = vector.broadcast %cst_79 : f32 to vector<16x16xf32>
    %181 = arith.mulf %179, %180 : vector<16x16xf32>
    %182 = vector.shape_cast %181 : vector<16x16xf32> to vector<2x8x16xf32>
    %183 = vector.extract_strided_slice %178 {offsets = [0, 16], sizes = [16, 16], strides = [1, 1]} : vector<16x96xf32> to vector<16x16xf32>
    %cst_80 = arith.constant 2.500000e-01 : f32
    %184 = vector.broadcast %cst_80 : f32 to vector<16x16xf32>
    %185 = arith.mulf %183, %184 : vector<16x16xf32>
    %186 = vector.shape_cast %185 : vector<16x16xf32> to vector<2x8x16xf32>
    %187 = tpu.concatenate %182, %186 in 0 : vector<2x8x16xf32>, vector<2x8x16xf32> -> vector<4x8x16xf32>
    %188 = arith.truncf %187 : vector<4x8x16xf32> to vector<4x8x16xbf16>
    %189 = vector.extract_strided_slice %178 {offsets = [0, 32], sizes = [16, 16], strides = [1, 1]} : vector<16x96xf32> to vector<16x16xf32>
    %190 = vector.shape_cast %189 : vector<16x16xf32> to vector<2x8x16xf32>
    %191 = vector.extract_strided_slice %178 {offsets = [0, 48], sizes = [16, 16], strides = [1, 1]} : vector<16x96xf32> to vector<16x16xf32>
    %192 = vector.shape_cast %191 : vector<16x16xf32> to vector<2x8x16xf32>
    %193 = tpu.concatenate %190, %192 in 0 : vector<2x8x16xf32>, vector<2x8x16xf32> -> vector<4x8x16xf32>
    %194 = arith.truncf %193 : vector<4x8x16xf32> to vector<4x8x16xbf16>
    %195 = vector.extract_strided_slice %178 {offsets = [0, 64], sizes = [16, 16], strides = [1, 1]} : vector<16x96xf32> to vector<16x16xf32>
    %196 = vector.shape_cast %195 : vector<16x16xf32> to vector<2x8x16xf32>
    %197 = vector.extract_strided_slice %178 {offsets = [0, 80], sizes = [16, 16], strides = [1, 1]} : vector<16x96xf32> to vector<16x16xf32>
    %198 = vector.shape_cast %197 : vector<16x16xf32> to vector<2x8x16xf32>
    %199 = tpu.concatenate %196, %198 in 0 : vector<2x8x16xf32>, vector<2x8x16xf32> -> vector<4x8x16xf32>
    %200 = arith.truncf %199 : vector<4x8x16xf32> to vector<4x8x16xbf16>
    "tpu.trace_start"() <{level = 10 : i32, message = "bqd,bkd->bqk"}> : () -> ()
    %cst_81 = arith.constant dense<0.000000e+00> : vector<4x8x8xf32>
    %201 = tpu.matmul %188, %194, %cst_81 {dimension_numbers = #tpu.dot_dimension_numbers<[2], [2], [1], [1], [0, 0, 0, 1, 1, 1], [0], [0]>} : vector<4x8x16xbf16>, vector<4x8x16xbf16>, vector<4x8x8xf32> -> vector<4x8x8xf32>
    "tpu.trace_stop"() : () -> ()
    %202 = vector.shape_cast %201 : vector<4x8x8xf32> to vector<2x2x8x8xf32>
    %203 = vector.shape_cast %26 : vector<2x1x8xf32> to vector<1x2x1x8xf32>
    %204 = vector.broadcast %203 : vector<1x2x1x8xf32> to vector<2x2x8x8xf32>
    %205 = arith.addf %202, %204 : vector<2x2x8x8xf32>
    %206 = vector.shape_cast %205 : vector<2x2x8x8xf32> to vector<4x8x8xf32>
    %cst_82 = arith.constant dense<0xFF800000> : vector<4x8xf32>
    %207 = vector.multi_reduction <maximumf>, %206, %cst_82 [2] : vector<4x8x8xf32> to vector<4x8xf32>
    %208 = vector.shape_cast %207 : vector<4x8xf32> to vector<4x8x1xf32>
    %209 = vector.broadcast %208 : vector<4x8x1xf32> to vector<4x8x8xf32>
    %210 = arith.subf %206, %209 : vector<4x8x8xf32>
    %211 = math.exp %210 : vector<4x8x8xf32>
    %cst_83 = arith.constant dense<0.000000e+00> : vector<4x8xf32>
    %212 = vector.multi_reduction <add>, %211, %cst_83 [2] : vector<4x8x8xf32> to vector<4x8xf32>
    %213 = vector.shape_cast %212 : vector<4x8xf32> to vector<4x8x1xf32>
    %214 = tpu.reciprocal %213 {approx = true} : vector<4x8x1xf32> -> vector<4x8x1xf32>
    %215 = vector.broadcast %214 : vector<4x8x1xf32> to vector<4x8x8xf32>
    %216 = arith.mulf %211, %215 : vector<4x8x8xf32>
    %217 = arith.truncf %216 : vector<4x8x8xf32> to vector<4x8x8xbf16>
    "tpu.trace_start"() <{level = 10 : i32, message = "bqk,bkd->bqd"}> : () -> ()
    %cst_84 = arith.constant dense<0.000000e+00> : vector<4x8x16xf32>
    %218 = tpu.matmul %217, %200, %cst_84 {dimension_numbers = #tpu.dot_dimension_numbers<[2], [1], [1], [2], [0, 0, 0, 1, 1, 2], [0], [0]>} : vector<4x8x8xbf16>, vector<4x8x16xbf16>, vector<4x8x16xf32> -> vector<4x8x16xf32>
    "tpu.trace_stop"() : () -> ()
    %219 = vector.extract_strided_slice %218 {offsets = [0, 0, 0], sizes = [2, 8, 16], strides = [1, 1, 1]} : vector<4x8x16xf32> to vector<2x8x16xf32>
    %220 = vector.shape_cast %219 : vector<2x8x16xf32> to vector<16x16xf32>
    %221 = vector.extract_strided_slice %218 {offsets = [2, 0, 0], sizes = [2, 8, 16], strides = [1, 1, 1]} : vector<4x8x16xf32> to vector<2x8x16xf32>
    %222 = vector.shape_cast %221 : vector<2x8x16xf32> to vector<16x16xf32>
    %223 = tpu.concatenate %220, %222 in 1 : vector<16x16xf32>, vector<16x16xf32> -> vector<16x32xf32>
    %224 = arith.truncf %223 : vector<16x32xf32> to vector<16x32xbf16>
    %c1_85 = arith.constant 1 : index
    %c0_86 = arith.constant 0 : index
    %c0_87 = arith.constant 0 : index
    %225 = vector.load %arg6[%c1_85, %c0_86, %c0_87] : memref<2x32x32xbf16, #tpu.memory_space<vmem>>, vector<1x32x32xbf16>
    %226 = vector.shape_cast %225 : vector<1x32x32xbf16> to vector<32x32xbf16>
    %cst_88 = arith.constant dense<0.000000e+00> : vector<16x32xf32>
    %227 = tpu.matmul %224, %226, %cst_88 {dimension_numbers = #tpu.dot_dimension_numbers<[1], [0], [0], [1], [0, 0, 1, 1], [], []>} : vector<16x32xbf16>, vector<32x32xbf16>, vector<16x32xf32> -> vector<16x32xf32>
    %c1_89 = arith.constant 1 : index
    %c0_90 = arith.constant 0 : index
    %c0_91 = arith.constant 0 : index
    %228 = vector.load %arg7[%c1_89, %c0_90, %c0_91] : memref<2x1x32xf32, #tpu.memory_space<vmem>>, vector<1x1x32xf32>
    %229 = vector.shape_cast %228 : vector<1x1x32xf32> to vector<1x32xf32>
    %230 = vector.broadcast %229 : vector<1x32xf32> to vector<16x32xf32>
    %231 = arith.addf %227, %230 : vector<16x32xf32>
    %232 = arith.addf %170, %231 : vector<16x32xf32>
    %c1_92 = arith.constant 1 : index
    %c0_93 = arith.constant 0 : index
    %c0_94 = arith.constant 0 : index
    %233 = vector.load %arg8[%c1_92, %c0_93, %c0_94] : memref<2x1x32xf32, #tpu.memory_space<vmem>>, vector<1x1x32xf32>
    %234 = vector.shape_cast %233 : vector<1x1x32xf32> to vector<1x32xf32>
    %c1_95 = arith.constant 1 : index
    %c0_96 = arith.constant 0 : index
    %c0_97 = arith.constant 0 : index
    %235 = vector.load %arg9[%c1_95, %c0_96, %c0_97] : memref<2x1x32xf32, #tpu.memory_space<vmem>>, vector<1x1x32xf32>
    %236 = vector.shape_cast %235 : vector<1x1x32xf32> to vector<1x32xf32>
    %cst_98 = arith.constant dense<0.000000e+00> : vector<16xf32>
    %237 = vector.multi_reduction <add>, %232, %cst_98 [1] : vector<16x32xf32> to vector<16xf32>
    %238 = vector.shape_cast %237 : vector<16xf32> to vector<16x1xf32>
    %cst_99 = arith.constant 3.200000e+01 : f32
    %239 = vector.broadcast %cst_99 : f32 to vector<16x1xf32>
    %240 = arith.divf %238, %239 : vector<16x1xf32>
    %241 = vector.broadcast %240 : vector<16x1xf32> to vector<16x32xf32>
    %242 = arith.subf %232, %241 : vector<16x32xf32>
    %243 = arith.mulf %242, %242 : vector<16x32xf32>
    %cst_100 = arith.constant dense<0.000000e+00> : vector<16xf32>
    %244 = vector.multi_reduction <add>, %243, %cst_100 [1] : vector<16x32xf32> to vector<16xf32>
    %245 = vector.shape_cast %244 : vector<16xf32> to vector<16x1xf32>
    %cst_101 = arith.constant 3.200000e+01 : f32
    %246 = vector.broadcast %cst_101 : f32 to vector<16x1xf32>
    %247 = arith.divf %245, %246 : vector<16x1xf32>
    %248 = vector.broadcast %240 : vector<16x1xf32> to vector<16x32xf32>
    %249 = arith.subf %232, %248 : vector<16x32xf32>
    %cst_102 = arith.constant 9.99999996E-13 : f32
    %250 = vector.broadcast %cst_102 : f32 to vector<16x1xf32>
    %251 = arith.addf %247, %250 : vector<16x1xf32>
    %252 = math.rsqrt %251 : vector<16x1xf32>
    %253 = vector.broadcast %252 : vector<16x1xf32> to vector<16x32xf32>
    %254 = arith.mulf %249, %253 : vector<16x32xf32>
    %255 = vector.broadcast %234 : vector<1x32xf32> to vector<16x32xf32>
    %256 = arith.mulf %254, %255 : vector<16x32xf32>
    %257 = vector.broadcast %236 : vector<1x32xf32> to vector<16x32xf32>
    %258 = arith.addf %256, %257 : vector<16x32xf32>
    %259 = arith.truncf %258 : vector<16x32xf32> to vector<16x32xbf16>
    %c1_103 = arith.constant 1 : index
    %c0_104 = arith.constant 0 : index
    %c0_105 = arith.constant 0 : index
    %260 = vector.load %arg10[%c1_103, %c0_104, %c0_105] : memref<2x32x64xbf16, #tpu.memory_space<vmem>>, vector<1x32x64xbf16>
    %261 = vector.shape_cast %260 : vector<1x32x64xbf16> to vector<32x64xbf16>
    %cst_106 = arith.constant dense<0.000000e+00> : vector<16x64xf32>
    %262 = tpu.matmul %259, %261, %cst_106 {dimension_numbers = #tpu.dot_dimension_numbers<[1], [0], [0], [1], [0, 0, 1, 1], [], []>} : vector<16x32xbf16>, vector<32x64xbf16>, vector<16x64xf32> -> vector<16x64xf32>
    %c1_107 = arith.constant 1 : index
    %c0_108 = arith.constant 0 : index
    %c0_109 = arith.constant 0 : index
    %263 = vector.load %arg11[%c1_107, %c0_108, %c0_109] : memref<2x1x64xf32, #tpu.memory_space<vmem>>, vector<1x1x64xf32>
    %264 = vector.shape_cast %263 : vector<1x1x64xf32> to vector<1x64xf32>
    %265 = vector.broadcast %264 : vector<1x64xf32> to vector<16x64xf32>
    %266 = arith.addf %262, %265 : vector<16x64xf32>
    %cst_110 = arith.constant 5.000000e-01 : f32
    %267 = vector.broadcast %cst_110 : f32 to vector<16x64xf32>
    %268 = arith.mulf %267, %266 : vector<16x64xf32>
    %cst_111 = arith.constant 4.471500e-02 : f32
    %269 = vector.broadcast %cst_111 : f32 to vector<16x64xf32>
    %270 = arith.mulf %269, %266 : vector<16x64xf32>
    %271 = arith.mulf %270, %266 : vector<16x64xf32>
    %272 = arith.mulf %271, %266 : vector<16x64xf32>
    %273 = arith.addf %266, %272 : vector<16x64xf32>
    %cst_112 = arith.constant 0.797884583 : f32
    %274 = vector.broadcast %cst_112 : f32 to vector<16x64xf32>
    %275 = arith.mulf %274, %273 : vector<16x64xf32>
    %276 = math.tanh %275 : vector<16x64xf32>
    %cst_113 = arith.constant 1.000000e+00 : f32
    %277 = vector.broadcast %cst_113 : f32 to vector<16x64xf32>
    %278 = arith.addf %277, %276 : vector<16x64xf32>
    %279 = arith.mulf %268, %278 : vector<16x64xf32>
    %280 = arith.truncf %279 : vector<16x64xf32> to vector<16x64xbf16>
    %c1_114 = arith.constant 1 : index
    %c0_115 = arith.constant 0 : index
    %c0_116 = arith.constant 0 : index
    %281 = vector.load %arg12[%c1_114, %c0_115, %c0_116] : memref<2x64x32xbf16, #tpu.memory_space<vmem>>, vector<1x64x32xbf16>
    %282 = vector.shape_cast %281 : vector<1x64x32xbf16> to vector<64x32xbf16>
    %cst_117 = arith.constant dense<0.000000e+00> : vector<16x32xf32>
    %283 = tpu.matmul %280, %282, %cst_117 {dimension_numbers = #tpu.dot_dimension_numbers<[1], [0], [0], [1], [0, 0, 1, 1], [], []>} : vector<16x64xbf16>, vector<64x32xbf16>, vector<16x32xf32> -> vector<16x32xf32>
    %c1_118 = arith.constant 1 : index
    %c0_119 = arith.constant 0 : index
    %c0_120 = arith.constant 0 : index
    %284 = vector.load %arg13[%c1_118, %c0_119, %c0_120] : memref<2x1x32xf32, #tpu.memory_space<vmem>>, vector<1x1x32xf32>
    %285 = vector.shape_cast %284 : vector<1x1x32xf32> to vector<1x32xf32>
    %286 = vector.broadcast %285 : vector<1x32xf32> to vector<16x32xf32>
    %287 = arith.addf %283, %286 : vector<16x32xf32>
    %288 = arith.addf %258, %287 : vector<16x32xf32>
    %c1_121 = arith.constant 1 : index
    %c0_122 = arith.constant 0 : index
    %c0_123 = arith.constant 0 : index
    %289 = vector.load %arg14[%c1_121, %c0_122, %c0_123] : memref<2x1x32xf32, #tpu.memory_space<vmem>>, vector<1x1x32xf32>
    %290 = vector.shape_cast %289 : vector<1x1x32xf32> to vector<1x32xf32>
    %c1_124 = arith.constant 1 : index
    %c0_125 = arith.constant 0 : index
    %c0_126 = arith.constant 0 : index
    %291 = vector.load %arg15[%c1_124, %c0_125, %c0_126] : memref<2x1x32xf32, #tpu.memory_space<vmem>>, vector<1x1x32xf32>
    %292 = vector.shape_cast %291 : vector<1x1x32xf32> to vector<1x32xf32>
    %cst_127 = arith.constant dense<0.000000e+00> : vector<16xf32>
    %293 = vector.multi_reduction <add>, %288, %cst_127 [1] : vector<16x32xf32> to vector<16xf32>
    %294 = vector.shape_cast %293 : vector<16xf32> to vector<16x1xf32>
    %cst_128 = arith.constant 3.200000e+01 : f32
    %295 = vector.broadcast %cst_128 : f32 to vector<16x1xf32>
    %296 = arith.divf %294, %295 : vector<16x1xf32>
    %297 = vector.broadcast %296 : vector<16x1xf32> to vector<16x32xf32>
    %298 = arith.subf %288, %297 : vector<16x32xf32>
    %299 = arith.mulf %298, %298 : vector<16x32xf32>
    %cst_129 = arith.constant dense<0.000000e+00> : vector<16xf32>
    %300 = vector.multi_reduction <add>, %299, %cst_129 [1] : vector<16x32xf32> to vector<16xf32>
    %301 = vector.shape_cast %300 : vector<16xf32> to vector<16x1xf32>
    %cst_130 = arith.constant 3.200000e+01 : f32
    %302 = vector.broadcast %cst_130 : f32 to vector<16x1xf32>
    %303 = arith.divf %301, %302 : vector<16x1xf32>
    %304 = vector.broadcast %296 : vector<16x1xf32> to vector<16x32xf32>
    %305 = arith.subf %288, %304 : vector<16x32xf32>
    %cst_131 = arith.constant 9.99999996E-13 : f32
    %306 = vector.broadcast %cst_131 : f32 to vector<16x1xf32>
    %307 = arith.addf %303, %306 : vector<16x1xf32>
    %308 = math.rsqrt %307 : vector<16x1xf32>
    %309 = vector.broadcast %308 : vector<16x1xf32> to vector<16x32xf32>
    %310 = arith.mulf %305, %309 : vector<16x32xf32>
    %311 = vector.broadcast %290 : vector<1x32xf32> to vector<16x32xf32>
    %312 = arith.mulf %310, %311 : vector<16x32xf32>
    %313 = vector.broadcast %292 : vector<1x32xf32> to vector<16x32xf32>
    %314 = arith.addf %312, %313 : vector<16x32xf32>
    %315 = vector.shape_cast %314 : vector<16x32xf32> to vector<2x8x32xf32>
    %316 = vector.extract_strided_slice %315 {offsets = [0, 0, 0], sizes = [2, 1, 32], strides = [1, 1, 1]} : vector<2x8x32xf32> to vector<2x1x32xf32>
    %317 = vector.shape_cast %316 : vector<2x1x32xf32> to vector<2x32xf32>
    %318 = arith.truncf %317 : vector<2x32xf32> to vector<2x32xbf16>
    %c0_132 = arith.constant 0 : index
    %c0_133 = arith.constant 0 : index
    %319 = vector.load %arg16[%c0_132, %c0_133] : memref<32x128xbf16, #tpu.memory_space<vmem>>, vector<32x128xbf16>
    %cst_134 = arith.constant dense<0.000000e+00> : vector<2x128xf32>
    %320 = tpu.matmul %318, %319, %cst_134 {dimension_numbers = #tpu.dot_dimension_numbers<[1], [0], [0], [1], [0, 0, 1, 1], [], []>} : vector<2x32xbf16>, vector<32x128xbf16>, vector<2x128xf32> -> vector<2x128xf32>
    %c0_135 = arith.constant 0 : index
    %c0_136 = arith.constant 0 : index
    %321 = vector.load %arg17[%c0_135, %c0_136] : memref<1x128xf32, #tpu.memory_space<vmem>>, vector<1x128xf32>
    %322 = vector.broadcast %321 : vector<1x128xf32> to vector<2x128xf32>
    %323 = arith.addf %320, %322 : vector<2x128xf32>
    %c0_137 = arith.constant 0 : index
    %c0_138 = arith.constant 0 : index
    %324 = vector.load %arg18[%c0_137, %c0_138] : memref<2x128xf32, #tpu.memory_space<vmem>>, vector<2x128xf32>
    tpu.vector_store %arg18[%c0_137, %c0_138], %323 {strides = array<i32>} : memref<2x128xf32, #tpu.memory_space<vmem>>, vector<2x128xf32>,
    return
  }
}

</mosaic_0001>

<bundles_post_ra>
// kernel: encode_and_classify.1
= control target key start
LH: loop header
LB: loop body
LE: loop exit
PB: predicated region body
PF: predicated region fallthrough
CT: control target
= control target key end

     0   :  { %s2952_s0 = inlined_call_operand.vmem [shape: f32[2,8,32], index: 0, kind: input, shape index: {}]   ;;  %s2953_s1 = inlined_call_operand.vmem [shape: f32[2,1,8], index: 1, kind: input, shape index: {}]   ;;  %s2954_s2 = inlined_call_operand.vmem [shape: f32[1,32], index: 2, kind: input, shape index: {}]   ;;  %s2955_s3 = inlined_call_operand.vmem [shape: f32[1,32], index: 3, kind: input, shape index: {}]   ;;  %s2956_s4 = inlined_call_operand.vmem [shape: bf16[2,32,96], index: 4, kind: input, shape index: {}]   ;;  %s2957_s5 = inlined_call_operand.vmem [shape: f32[2,1,96], index: 5, kind: input, shape index: {}]   ;;  %s2958_s6 = inlined_call_operand.vmem [shape: bf16[2,32,32], index: 6, kind: input, shape index: {}]   ;;  %s2959_s7 = inlined_call_operand.vmem [shape: f32[2,1,32], index: 7, kind: input, shape index: {}]   ;;  %s2960_s8 = inlined_call_operand.vmem [shape: f32[2,1,32], index: 8, kind: input, shape index: {}]   ;;  %s2961_s9 = inlined_call_operand.vmem [shape: f32[2,1,32], index: 9, kind: input, shape index: {}]   ;;  %s2962_s10 = inlined_call_operand.vmem [shape: bf16[2,32,64], index: 10, kind: input, shape index: {}]   ;;  %s2963_s11 = inlined_call_operand.vmem [shape: f32[2,1,64], index: 11, kind: input, shape index: {}]   ;;  %s2964_s12 = inlined_call_operand.vmem [shape: bf16[2,64,32], index: 12, kind: input, shape index: {}]   ;;  %s2965_s13 = inlined_call_operand.vmem [shape: f32[2,1,32], index: 13, kind: input, shape index: {}]   ;;  %s2966_s14 = inlined_call_operand.vmem [shape: f32[2,1,32], index: 14, kind: input, shape index: {}]   ;;  %s2967_s15 = inlined_call_operand.vmem [shape: f32[2,1,32], index: 15, kind: input, shape index: {}]   ;;  %s2968_s16 = inlined_call_operand.vmem [shape: bf16[32,128], index: 16, kind: input, shape index: {}]   ;;  %s2969_s17 = inlined_call_operand.vmem [shape: f32[1,128], index: 17, kind: input, shape index: {}]   ;;  %s2970_s18 = inlined_call_operand.hbm [shape: f32[2,128], index: 18, kind: output, shape index: {}]  }
   0x1   :  { %2973 = sst [smem:[#allocation5_spill]] %s2952_s0 }
   0x2   :  { %2974 = sst [smem:[#allocation6_spill]] %s2953_s1 }
   0x3   :  { %2975 = sst [smem:[#allocation7_spill]] %s2954_s2 }
   0x4   :  { %s2976_s29 = sld [smem:[#allocation5_spill]]  ;;  %vm65_vm0 = vcmask 261120  }
   0xa   :  { %v61_v0 = vld [vmem:[%s2976_s29] sm:$0xff]  ;;  %v62_v1 = vld [vmem:[%s2976_s29 + $0x8] sm:$0xff] }
   0xb   :  { %v66_v2 = vsel %vm65_vm0, %v61_v0, 0.0  ;;  %v69_v3 = vsel %vm65_vm0, %v62_v1, 0.0 }
   0xc   :  { %67 = vadd.xlane.f32.xlu0 %v66_v2 }
  0x10   :  { %70 = vadd.xlane.f32.xlu0 %v69_v3 }
  0x11   :  { %23 = vsyncpa [#allocation3], 0  ;;  %v2350_v14 = vld [vmem:[%s2956_s4] sm:$0xff]   ;;  %v2456_v15 = vmov 0.0   ;;  %v2351_v16 = vld [vmem:[%s2956_s4 + $0x8] sm:$0xff]   ;;  %vm2457_vm1 = vmmov 0  }
  0x12   :  { %2137 = vmatprep.subr.bf16.mxu0 %v2456_v15  ;;  %2145 = vmatprep.subr.bf16.mxu1 %v2456_v15  ;;  %s2977_s23 = sld [smem:[#allocation7_spill]]  ;;  %v1979_v29 = vld [vmem:[%s2955_s3] ss:$0 sm:$0xff]  ;;  %s2458_s3 = smov 96   ;;  %vm208_vm2 = vcmask 130048   ;;  %vm418_vm3 = vcmask 64512  }
  0x13   :  { %2138 = vmatpush3.bf16.msra.mxu0 %v2350_v14  ;;  %2141 = vmatprep.mubr.msk.bf16.mxu0 %vm2457_vm1, %v2456_v15  ;;  %v1980_v34 = vld [vmem:[%s2957_s5] ss:$0 sm:$0xff]  ;;  %s2459_s28 = smov 112   ;;  %s2978_s0 = sld [smem:[#allocation6_spill]]  ;;  %vm472_vm4 = vcmask 1043456   ;;  %vm910_vm5 = vcmask 523264  }
  0x14   :  { %2139 = vmatprep.subr.bf16.mxu0 %v2456_v15  ;;  %2147 = vmatprep.mubr.msk.bf16.mxu1 %vm2457_vm1, %v2456_v15  ;;  %s2460_s20 = smov 64   ;;  %s2461_s24 = smov 16   ;;  %vm1905_vm6 = vcmask 1041409  }
  0x17   :  { %2140 = vmatpush3.bf16.msra.mxu0 %v2351_v16 }
  0x18   :  { %2151 = vmatprep.subr.bf16.mxu0 %v2456_v15  ;;  %v1978_v25 = vld [vmem:[%s2977_s23] ss:$0 sm:$0xff] }
  0x19   :  { %v2641_v3 = vld [vmem:[%s2978_s0] ss:$0 sm:$0xff] }
  0x99   :  { %v68_v4 = vpop.xlane.xlu0 %67 }
  0x9a   :  { %v73_v5 = vmul.f32 0.03125, %v68_v4 }
  0x9c   :  { %v75_v6 = vsub.f32 %v61_v0, %v73_v5 }
  0x9d   :  { %v71_v7 = vpop.xlane.xlu0 %70 }
  0x9e   :  { %v74_v8 = vmul.f32 0.03125, %v71_v7  ;;  %v77_v9 = vmul.f32 %v75_v6, %v75_v6 }
  0xa0   :  { %v76_v10 = vsub.f32 %v62_v1, %v74_v8  ;;  %v79_v11 = vsel %vm65_vm0, %v77_v9, 0.0  ;;  %v2647_v8 = vld [vmem:[%s2978_s0 + $0x1] ss:$0 sm:$0xff] }
  0xa1   :  { %80 = vadd.xlane.f32.xlu1 %v79_v11 }
  0xa2   :  { %v78_v12 = vmul.f32 %v76_v10, %v76_v10 }
  0xa4   :  { %v82_v13 = vsel %vm65_vm0, %v78_v12, 0.0 }
  0xa5   :  { %83 = vadd.xlane.f32.xlu1 %v82_v13 }
 0x12e   :  { %v81_v17 = vpop.xlane.xlu1 %80 }
 0x12f   :  { %v85_v18 = vmul.f32 0.03125, %v81_v17 }
 0x131   :  { %v87_v19 = vadd.f32 1e-12, %v85_v18 }
 0x132   :  { %v84_v20 = vpop.xlane.xlu1 %83 }
 0x133   :  { %2372 = vrsqrt.f32 %v87_v19  ;;  %v86_v21 = vmul.f32 0.03125, %v84_v20 }
 0x135   :  { %v88_v22 = vadd.f32 1e-12, %v86_v21 }
 0x137   :  { %2374 = vrsqrt.f32 %v88_v22 }
 0x13d   :  { %v2373_v23 = vpop.eup %2372 }
 0x13e   :  { %v91_v24 = vmul.f32 %v2373_v23, %v75_v6 }
 0x140   :  { %v99_v28 = vmul.f32 %v1978_v25, %v91_v24 }
 0x141   :  { %v2375_v26 = vpop.eup %2374 }
 0x142   :  { %v92_v27 = vmul.f32 %v2375_v26, %v76_v10  ;;  %v2588_v31 = vadd.f32 %v1979_v29, %v99_v28 }
 0x144   :  { %v100_v30 = vmul.f32 %v1978_v25, %v92_v27 }
 0x146   :  { %v2590_v32 = vadd.f32 %v1979_v29, %v100_v30 }
 0x148   :  { %v111_v33 = vpack.c.bf16 %v2590_v32, %v2588_v31 }
 0x14a   :  { %2142 = vmatmul.mubr.msk.bf16.vlgmr.msra.gmra.mrb[0].mxu0 %vm65_vm0, %v111_v33 }
 0x14b   :  { %2153 = vmatprep.mubr.msk.bf16.mxu0 %vm2457_vm1, %v2456_v15 }
 0x21d   :  { %v172_v35 = vpop.f32.mrb[0].mxu0 }
 0x21e   :  { %v173_v36 = vadd.f32 %v1980_v34, %v172_v35  ;;  %v2143_v37 = vpop.f32.mrb[1].mxu0 }
 0x21f   :  { %v175_v38 = vpop.f32.mrb[2].mxu0 }
 0x220   :  { %v176_v39 = vadd.f32 %v1980_v34, %v175_v38  ;;  %v2144_v40 = vpop.f32.mrb[3].mxu0  ;;  %v2600_v41 = vpack.c.bf16 %v173_v36, %v173_v36  ;;  %v179_v42 = vmul.f32 0.25, %v173_v36 }
 0x222   :  { %v180_v43 = vmul.f32 0.25, %v176_v39  ;;  %206 = vrot.lane.b32.xlu1 %v2600_v41, %s2458_s3  ;;  %v2320_v44 = vpack.i.bf16 %v176_v39, %v173_v36  ;;  %v2605_v45 = vpack.c.bf16 %v176_v39, %v176_v39  ;;  %v189_v56 = vpack.c.bf16 %v179_v42, %v179_v42 }
 0x224   :  { %2321 = vrot.lane.b32.xlu0 %v2320_v44, %s2459_s28  ;;  %v2325_v46 = vpack.i.bf16 %v180_v43, %v179_v42  ;;  %v190_v57 = vpack.c.bf16 %v180_v43, %v180_v43 }
 0x226   :  { %256 = vrot.lane.b32.xlu1 %v2605_v45, %s2458_s3 }
 0x294   :  { %v207_v47 = vpop.permute.xlu1 %206 }
 0x295   :  { %v213_v48 = vsel %vm208_vm2, %v207_v47, 0 }
 0x296   :  { %2146 = vmatpush3.bf16.xpose.msra.mxu1 %v213_v48  ;;  %v2322_v49 = vpop.permute.xlu0 %2321 }
 0x297   :  { %v2324_v50 = vunpack.i.h.bf16 %v2322_v49  ;;  %v2323_v51 = vunpack.i.l.bf16 %v2322_v49  ;;  %2157 = vmatprep.subr.bf16.mxu1 %v2456_v15 }
 0x298   :  { %v257_v52 = vpop.permute.xlu1 %256 }
 0x299   :  { %v2611_v53 = vpack.c.bf16 %v2324_v50, %v2324_v50  ;;  %v2613_v54 = vpack.c.bf16 %v2323_v51, %v2323_v51  ;;  %v262_v55 = vsel %vm208_vm2, %v257_v52, 0 }
 0x29a   :  { %2152 = vmatpush3.bf16.xpose.msra.mxu0 %v262_v55 }
 0x29b   :  { %354 = vrot.lane.b32.xlu0 %v2611_v53, %s2458_s3  ;;  %305 = vrot.lane.b32.xlu1 %v2613_v54, %s2458_s3 }
 0x29c   :  { %2163 = vmatprep.subr.bf16.mxu0 %v2456_v15 }
 0x29d   :  { %2148 = vmatmul.mubr.msk.bf16.vlgmr.msra.gmra.mrb[0].mxu1 %vm208_vm2, %v189_v56 }
 0x29e   :  { %2159 = vmatprep.mubr.msk.bf16.mxu1 %vm2457_vm1, %v2456_v15 }
 0x29f   :  { %2326 = vrot.lane.b32.xlu1 %v2325_v46, %s2459_s28 }
 0x2a1   :  { %2154 = vmatmul.mubr.msk.bf16.vlgmr.msra.gmra.mrb[4].mxu0 %vm208_vm2, %v190_v57 }
 0x2a2   :  { %2165 = vmatprep.mubr.msk.bf16.mxu0 %vm2457_vm1, %v2456_v15 }
 0x30d   :  { %v355_v58 = vpop.permute.xlu0 %354  ;;  %v306_v59 = vpop.permute.xlu1 %305 }
 0x30e   :  { %v360_v60 = vsel %vm208_vm2, %v355_v58, 0  ;;  %v311_v61 = vsel %vm208_vm2, %v306_v59, 0 }
 0x30f   :  { %2158 = vmatpush3.bf16.xpose.msra.mxu1 %v311_v61  ;;  %2164 = vmatpush3.bf16.xpose.msra.mxu0 %v360_v60 }
 0x310   :  { %2175 = vmatprep.subr.bf16.mxu0 %v2456_v15  ;;  %2169 = vmatprep.subr.bf16.mxu1 %v2456_v15 }
 0x311   :  { %v2327_v62 = vpop.permute.xlu1 %2326 }
 0x312   :  { %v2329_v63 = vunpack.i.h.bf16 %v2327_v62  ;;  %v2328_v0 = vunpack.i.l.bf16 %v2327_v62 }
 0x314   :  { %v192_v1 = vpack.c.bf16 %v2329_v63, %v2329_v63  ;;  %v191_v2 = vpack.c.bf16 %v2328_v0, %v2328_v0 }
 0x316   :  { %2160 = vmatmul.mubr.msk.bf16.vlgmr.msra.gmra.mrb[4].mxu1 %vm208_vm2, %v191_v2  ;;  %2166 = vmatmul.mubr.msk.bf16.vlgmr.msra.gmra.mrb[8].mxu0 %vm208_vm2, %v192_v1 }
 0x317   :  { %2177 = vmatprep.mubr.msk.bf16.mxu0 %vm2457_vm1, %v2456_v15  ;;  %2171 = vmatprep.mubr.msk.bf16.mxu1 %vm2457_vm1, %v2456_v15 }
 0x370   :  { %v249_v4 = vpop.f32.mrb[0].mxu1 }
 0x371   :  { %v414_v5 = vadd.f32 %v2641_v3, %v249_v4  ;;  %v2149_v6 = vpop.f32.mrb[1].mxu1 }
 0x372   :  { %v252_v7 = vpop.f32.mrb[2].mxu1 }
 0x373   :  { %v2150_v9 = vpop.f32.mrb[3].mxu1  ;;  %v419_v10 = vsel %vm418_vm3, %v414_v5, -inf }
 0x374   :  { %420 = vmax.xlane.f32.xlu0 %v419_v10  ;;  %v298_v11 = vpop.f32.mrb[4].mxu0 }
 0x375   :  { %v415_v12 = vadd.f32 %v2647_v8, %v298_v11  ;;  %v2155_v13 = vpop.f32.mrb[5].mxu0 }
 0x376   :  { %v301_v14 = vpop.f32.mrb[6].mxu0 }
 0x377   :  { %v2156_v16 = vpop.f32.mrb[7].mxu0  ;;  %v422_v17 = vsel %vm418_vm3, %v415_v12, -inf  ;;  %v2352_v14 = vld [vmem:[%s2958_s6] sm:$0xff]  }
 0x378   :  { %423 = vmax.xlane.f32.xlu1 %v422_v17 }
 0x3e9   :  { %v347_v18 = vpop.f32.mrb[4].mxu1  ;;  %v396_v19 = vpop.f32.mrb[8].mxu0 }
 0x3ea   :  { %v416_v20 = vadd.f32 %v2641_v3, %v347_v18  ;;  %v2161_v21 = vpop.f32.mrb[5].mxu1  ;;  %v2167_v22 = vpop.f32.mrb[9].mxu0  ;;  %v417_v25 = vadd.f32 %v2647_v8, %v396_v19 }
 0x3eb   :  { %v350_v23 = vpop.f32.mrb[6].mxu1  ;;  %v399_v24 = vpop.f32.mrb[10].mxu0  ;;  %v2353_v22 = vld [vmem:[%s2958_s6 + $0x8] sm:$0xff]  }
 0x3ec   :  { %v2162_v26 = vpop.f32.mrb[7].mxu1  ;;  %v2168_v27 = vpop.f32.mrb[11].mxu0  ;;  %v425_v28 = vsel %vm418_vm3, %v416_v20, -inf  ;;  %v428_v29 = vsel %vm418_vm3, %v417_v25, -inf }
 0x3ed   :  { %426 = vmax.xlane.f32.xlu0 %v425_v28 }
 0x3f1   :  { %429 = vmax.xlane.f32.xlu0 %v428_v29 }
 0x401   :  { %v421_v30 = vpop.xlane.xlu0 %420 }
 0x402   :  { %v431_v33 = vsub.f32 %v414_v5, %v421_v30 }
 0x404   :  { %v435_v34 = vmul.f32 1.442695, %v431_v33 }
 0x405   :  { %v424_v35 = vpop.xlane.xlu1 %423 }
 0x406   :  { %2376 = vpow2.f32 %v435_v34  ;;  %v432_v36 = vsub.f32 %v415_v12, %v424_v35 }
 0x408   :  { %v437_v37 = vmul.f32 1.442695, %v432_v36 }
 0x40a   :  { %2378 = vpow2.f32 %v437_v37 }
 0x410   :  { %v2377_v38 = vpop.eup %2376 }
 0x411   :  { %v443_v39 = vsel %vm418_vm3, %v2377_v38, 0.0 }
 0x412   :  { %444 = vadd.xlane.f32.xlu0 %v443_v39 }
 0x414   :  { %v2379_v40 = vpop.eup %2378 }
 0x415   :  { %v446_v42 = vsel %vm418_vm3, %v2379_v40, 0.0 }
 0x416   :  { %447 = vadd.xlane.f32.xlu1 %v446_v42 }
 0x427   :  { %516 = vrot.lane.b32.xlu1 %v2605_v45, %s2460_s20 }
 0x42b   :  { %564 = vrot.lane.b32.xlu1 %v2613_v54, %s2460_s20 }
 0x47a   :  { %v427_v43 = vpop.xlane.xlu0 %426 }
 0x47b   :  { %v433_v44 = vsub.f32 %v416_v20, %v427_v43  ;;  %v1994_v43 = vld [vmem:[%s2959_s7] ss:$0 sm:$0xff] }
 0x47d   :  { %v439_v46 = vmul.f32 1.442695, %v433_v44 }
 0x47e   :  { %v430_v47 = vpop.xlane.xlu0 %429 }
 0x47f   :  { %2380 = vpow2.f32 %v439_v46  ;;  %v434_v48 = vsub.f32 %v417_v25, %v430_v47 }
 0x481   :  { %v441_v49 = vmul.f32 1.442695, %v434_v48 }
 0x483   :  { %2382 = vpow2.f32 %v441_v49 }
 0x489   :  { %v2381_v50 = vpop.eup %2380 }
 0x48a   :  { %v449_v51 = vsel %vm418_vm3, %v2381_v50, 0.0 }
 0x48b   :  { %450 = vadd.xlane.f32.xlu0 %v449_v51 }
 0x48d   :  { %v2383_v52 = vpop.eup %2382 }
 0x48e   :  { %v452_v55 = vsel %vm418_vm3, %v2383_v52, 0.0 }
 0x48f   :  { %453 = vadd.xlane.f32.xlu1 %v452_v55 }
 0x4a0   :  { %612 = vrot.lane.b32.xlu1 %v2611_v53, %s2460_s20  ;;  %v445_v53 = vpop.xlane.xlu0 %444 }
 0x4a1   :  { %467 = vrot.lane.b32.xlu0 %v2600_v41, %s2460_s20 }
 0x4a3   :  { %v448_v45 = vpop.xlane.xlu1 %447 }
 0x4a4   :  { %2384 = vrcp.f32 %v448_v45 }
 0x4a5   :  { %2386 = vrcp.f32 %v445_v53 }
 0x4a7   :  { %v517_v54 = vpop.permute.xlu1 %516 }
 0x4a8   :  { %v522_v56 = vsel %vm472_vm4, %v517_v54, 0 }
 0x4a9   :  { %2176 = vmatpush3.bf16.msra.mxu0 %v522_v56 }
 0x4aa   :  { %2187 = vmatprep.subr.bf16.mxu0 %v2456_v15 }
 0x4ab   :  { %v565_v60 = vpop.permute.xlu1 %564 }
 0x4ac   :  { %v570_v5 = vsel %vm472_vm4, %v565_v60, 0 }
 0x4ae   :  { %v2385_v57 = vpop.eup %2384 }
 0x4af   :  { %v460_v58 = vmul.f32 %v2385_v57, %v2379_v40  ;;  %v2387_v41 = vpop.eup %2386 }
 0x4b0   :  { %v459_v62 = vmul.f32 %v2387_v41, %v2377_v38 }
 0x4b1   :  { %v464_v59 = vpack.c.bf16 %v460_v58, %v460_v58 }
 0x4b2   :  { %v463_v2 = vpack.c.bf16 %v459_v62, %v459_v62  ;;  %v2355_v62 = vld [vmem:[%s2962_s10 + $0x8] sm:$0xff]  }
 0x4b3   :  { %2178 = vmatmul.mubr.msk.bf16.vlgmr.msra.gmra.mrb[12].mxu0 %vm418_vm3, %v464_v59 }
 0x4b4   :  { %2189 = vmatprep.mubr.msk.bf16.mxu0 %vm2457_vm1, %v2456_v15 }
 0x518   :  { %v451_v61 = vpop.xlane.xlu0 %450 }
 0x519   :  { %2388 = vrcp.f32 %v451_v61 }
 0x51c   :  { %v454_v63 = vpop.xlane.xlu1 %453  ;;  %v468_v0 = vpop.permute.xlu0 %467 }
 0x51d   :  { %2390 = vrcp.f32 %v454_v63  ;;  %v474_v1 = vsel %vm472_vm4, %v468_v0, 0 }
 0x51e   :  { %2170 = vmatpush3.bf16.msra.mxu1 %v474_v1 }
 0x51f   :  { %2181 = vmatprep.subr.bf16.mxu1 %v2456_v15 }
 0x520   :  { %v613_v4 = vpop.permute.xlu1 %612 }
 0x521   :  { %v618_v6 = vsel %vm472_vm4, %v613_v4, 0  ;;  %2172 = vmatmul.mubr.msk.bf16.vlgmr.msra.gmra.mrb[8].mxu1 %vm418_vm3, %v463_v2 }
 0x522   :  { %2182 = vmatpush3.bf16.msra.mxu1 %v570_v5  ;;  %2188 = vmatpush3.bf16.msra.mxu0 %v618_v6 }
 0x523   :  { %v2389_v7 = vpop.eup %2388  ;;  %2183 = vmatprep.mubr.msk.bf16.mxu1 %vm2457_vm1, %v2456_v15  ;;  %2193 = vmatprep.subr.bf16.mxu1 %v2456_v15 }
 0x524   :  { %v461_v9 = vmul.f32 %v2389_v7, %v2381_v50  ;;  %2201 = vmatprep.subr.bf16.mxu0 %v2456_v15 }
 0x526   :  { %v465_v10 = vpack.c.bf16 %v461_v9, %v461_v9  ;;  %v1998_v9 = vld [vmem:[%s2960_s8] ss:$0 sm:$0xff] }
 0x527   :  { %v2391_v11 = vpop.eup %2390 }
 0x528   :  { %v462_v12 = vmul.f32 %v2391_v11, %v2383_v52 }
 0x529   :  { %2184 = vmatmul.mubr.msk.bf16.vlgmr.msra.gmra.mrb[12].mxu1 %vm418_vm3, %v465_v10 }
 0x52a   :  { %v466_v13 = vpack.c.bf16 %v462_v12, %v462_v12  ;;  %2197 = vmatprep.mubr.msk.bf16.mxu1 %vm2457_vm1, %v2456_v15  ;;  %2194 = vmatpush3.bf16.msra.mxu1 %v2352_v14 }
 0x52b   :  { %2195 = vmatprep.subr.bf16.mxu1 %v2456_v15 }
 0x52c   :  { %2190 = vmatmul.mubr.msk.bf16.vlgmr.msra.gmra.mrb[16].mxu0 %vm418_vm3, %v466_v13  ;;  %v1999_v13 = vld [vmem:[%s2961_s9] ss:$0 sm:$0xff] }
 0x52d   :  { %2205 = vmatprep.mubr.msk.bf16.mxu0 %vm2457_vm1, %v2456_v15 }
 0x52e   :  { %2196 = vmatpush3.bf16.msra.mxu1 %v2353_v22  ;;  %v2359_v22 = vld [vmem:[%s2964_s12 + $0x18] sm:$0xff]  }
 0x52f   :  { %2209 = vmatprep.subr.bf16.mxu1 %v2456_v15 }
 0x586   :  { %v558_v16 = vpop.f32.mrb[12].mxu0 }
 0x587   :  { %v2179_v17 = vpop.f32.mrb[13].mxu0 }
 0x588   :  { %v561_v18 = vpop.f32.mrb[14].mxu0 }
 0x589   :  { %v2180_v19 = vpop.f32.mrb[15].mxu0 }
 0x58a   :  { %v2356_v19 = vld [vmem:[%s2964_s12] sm:$0xff]  }
 0x5f4   :  { %v510_v20 = vpop.f32.mrb[8].mxu1 }
 0x5f5   :  { %v2173_v21 = vpop.f32.mrb[9].mxu1 }
 0x5f6   :  { %v513_v23 = vpop.f32.mrb[10].mxu1  ;;  %v2358_v21 = vld [vmem:[%s2964_s12 + $0x10] sm:$0xff]  }
 0x5f7   :  { %v2174_v24 = vpop.f32.mrb[11].mxu1  ;;  %v2000_v23 = vld [vmem:[%s2963_s11] ss:$0 sm:$0xff] }
 0x5fc   :  { %v606_v25 = vpop.f32.mrb[12].mxu1 }
 0x5fd   :  { %v2185_v26 = vpop.f32.mrb[13].mxu1 }
 0x5fe   :  { %v609_v27 = vpop.f32.mrb[14].mxu1 }
 0x5ff   :  { %v2186_v28 = vpop.f32.mrb[15].mxu1  ;;  %v654_v29 = vpop.f32.mrb[16].mxu0 }
 0x600   :  { %v2330_v30 = vpack.i.bf16 %v654_v29, %v606_v25  ;;  %v2191_v33 = vpop.f32.mrb[17].mxu0 }
 0x601   :  { %v657_v34 = vpop.f32.mrb[18].mxu0 }
 0x602   :  { %2331 = vrot.lane.b32.xlu0 %v2330_v30, %s2461_s24  ;;  %v2192_v35 = vpop.f32.mrb[19].mxu0 }
 0x674   :  { %v2332_v36 = vpop.permute.xlu0 %2331 }
 0x675   :  { %v2334_v37 = vunpack.i.h.bf16 %v2332_v36  ;;  %v2333_v38 = vunpack.i.l.bf16 %v2332_v36 }
 0x677   :  { %v669_v39 = vsel %vm208_vm2, %v558_v16, %v2334_v37  ;;  %v668_v40 = vsel %vm208_vm2, %v510_v20, %v2333_v38  ;;  %v2357_v20 = vld [vmem:[%s2964_s12 + $0x8] sm:$0xff]  }
 0x678   :  { %v670_v42 = vpack.c.bf16 %v669_v39, %v668_v40 }
 0x67a   :  { %2198 = vmatmul.mubr.msk.bf16.vlgmr.msra.gmra.mrb[16].mxu1 %vm65_vm0, %v670_v42 }
 0x67b   :  { %2217 = vmatprep.mubr.msk.bf16.mxu1 %vm2457_vm1, %v2456_v15  ;;  %2210 = vmatpush3.bf16.msra.mxu1 %v2356_v19 }
 0x67c   :  { %2211 = vmatprep.subr.bf16.mxu1 %v2456_v15 }
 0x67f   :  { %2212 = vmatpush3.bf16.msra.mxu1 %v2357_v20 }
 0x680   :  { %2213 = vmatprep.subr.bf16.mxu1 %v2456_v15 }
 0x683   :  { %2214 = vmatpush3.bf16.msra.mxu1 %v2358_v21 }
 0x684   :  { %2215 = vmatprep.subr.bf16.mxu1 %v2456_v15 }
 0x687   :  { %2216 = vmatpush3.bf16.msra.mxu1 %v2359_v22 }
 0x688   :  { %2235 = vmatprep.subr.bf16.mxu1 %v2456_v15 }
 0x74d   :  { %v731_v44 = vpop.f32.mrb[16].mxu1 }
 0x74e   :  { %v732_v46 = vadd.f32 %v1994_v43, %v731_v44  ;;  %v2199_v47 = vpop.f32.mrb[17].mxu1 }
 0x74f   :  { %v734_v48 = vpop.f32.mrb[18].mxu1 }
 0x750   :  { %v735_v49 = vadd.f32 %v1994_v43, %v734_v48  ;;  %v2200_v50 = vpop.f32.mrb[19].mxu1  ;;  %v738_v51 = vadd.f32 %v732_v46, %v2588_v31 }
 0x752   :  { %v742_v52 = vsel %vm65_vm0, %v738_v51, 0.0  ;;  %v739_v55 = vadd.f32 %v735_v49, %v2590_v32  ;;  %v2354_v32 = vld [vmem:[%s2962_s10] sm:$0xff]  }
 0x753   :  { %743 = vadd.xlane.f32.xlu1 %v742_v52  ;;  %2202 = vmatpush3.bf16.msra.mxu0 %v2354_v32 }
 0x754   :  { %v745_v45 = vsel %vm65_vm0, %v739_v55, 0.0  ;;  %2203 = vmatprep.subr.bf16.mxu0 %v2456_v15 }
 0x755   :  { %746 = vadd.xlane.f32.xlu0 %v745_v45 }
 0x757   :  { %2204 = vmatpush3.bf16.msra.mxu0 %v2355_v62 }
 0x758   :  { %2221 = vmatprep.subr.bf16.mxu0 %v2456_v15 }
 0x7e0   :  { %v744_v54 = vpop.xlane.xlu1 %743 }
 0x7e1   :  { %v748_v56 = vmul.f32 0.03125, %v744_v54 }
 0x7e2   :  { %v747_v57 = vpop.xlane.xlu0 %746 }
 0x7e3   :  { %v750_v58 = vsub.f32 %v738_v51, %v748_v56  ;;  %v749_v59 = vmul.f32 0.03125, %v747_v57 }
 0x7e5   :  { %v751_v53 = vsub.f32 %v739_v55, %v749_v59  ;;  %v752_v41 = vmul.f32 %v750_v58, %v750_v58  ;;  %v2004_v55 = vld [vmem:[%s2965_s13] ss:$0 sm:$0xff] }
 0x7e7   :  { %v754_v60 = vsel %vm65_vm0, %v752_v41, 0.0  ;;  %v753_v61 = vmul.f32 %v751_v53, %v751_v53 }
 0x7e8   :  { %755 = vadd.xlane.f32.xlu0 %v754_v60 }
 0x7e9   :  { %v757_v31 = vsel %vm65_vm0, %v753_v61, 0.0 }
 0x7ec   :  { %758 = vadd.xlane.f32.xlu0 %v757_v31 }
 0x875   :  { %v756_v63 = vpop.xlane.xlu0 %755 }
 0x876   :  { %v760_v0 = vmul.f32 0.03125, %v756_v63 }
 0x878   :  { %v762_v1 = vadd.f32 1e-12, %v760_v0 }
 0x879   :  { %v759_v2 = vpop.xlane.xlu0 %758 }
 0x87a   :  { %2392 = vrsqrt.f32 %v762_v1  ;;  %v761_v4 = vmul.f32 0.03125, %v759_v2 }
 0x87c   :  { %v763_v5 = vadd.f32 1e-12, %v761_v4 }
 0x87e   :  { %2394 = vrsqrt.f32 %v763_v5 }
 0x884   :  { %v2393_v6 = vpop.eup %2392 }
 0x885   :  { %v766_v7 = vmul.f32 %v2393_v6, %v750_v58 }
 0x887   :  { %v774_v11 = vmul.f32 %v1998_v9, %v766_v7  ;;  %v2360_v7 = vld [vmem:[%s2956_s4 + $0x10] sm:$0xff]  }
 0x888   :  { %v2395_v10 = vpop.eup %2394 }
 0x889   :  { %v767_v12 = vmul.f32 %v2395_v10, %v751_v53  ;;  %v782_v16 = vadd.f32 %v1999_v13, %v774_v11 }
 0x88b   :  { %v775_v14 = vmul.f32 %v1998_v9, %v767_v12  ;;  %v2361_v9 = vld [vmem:[%s2956_s4 + $0x18] sm:$0xff]  }
 0x88d   :  { %v783_v17 = vadd.f32 %v1999_v13, %v775_v14 }
 0x88f   :  { %v784_v18 = vpack.c.bf16 %v783_v17, %v782_v16 }
 0x891   :  { %2206 = vmatmul.mubr.msk.bf16.vlgmr.msra.gmra.mrb[20].mxu0 %vm65_vm0, %v784_v18  ;;  %v2010_v18 = vld [vmem:[%s2966_s14] ss:$0 sm:$0xff] }
 0x892   :  { %2225 = vmatprep.mubr.msk.bf16.mxu0 %vm2457_vm1, %v2456_v15  ;;  %2222 = vmatpush3.bf16.msra.mxu0 %v2360_v7 }
 0x893   :  { %2223 = vmatprep.subr.bf16.mxu0 %v2456_v15 }
 0x896   :  { %2224 = vmatpush3.bf16.msra.mxu0 %v2361_v9 }
 0x897   :  { %2229 = vmatprep.subr.bf16.mxu0 %v2456_v15 }
 0x964   :  { %v845_v24 = vpop.f32.mrb[20].mxu0 }
 0x965   :  { %v846_v25 = vadd.f32 %v2000_v23, %v845_v24  ;;  %v2207_v26 = vpop.f32.mrb[21].mxu0 }
 0x966   :  { %v848_v27 = vpop.f32.mrb[22].mxu0 }
 0x967   :  { %v854_v28 = vmul.f32 0.044715, %v846_v25  ;;  %v849_v29 = vadd.f32 %v2000_v23, %v848_v27  ;;  %v2208_v30 = vpop.f32.mrb[23].mxu0  ;;  %v852_v47 = vmul.f32 0.5, %v846_v25  ;;  %v2011_v23 = vld [vmem:[%s2967_s15] ss:$0 sm:$0xff] }
 0x969   :  { %v856_v33 = vmul.f32 %v854_v28, %v846_v25  ;;  %v855_v34 = vmul.f32 0.044715, %v849_v29  ;;  %v853_v48 = vmul.f32 0.5, %v849_v29  ;;  %v2017_v28 = vld [vmem:[%s2957_s5 + $0x1] ss:$0 sm:$0xff] }
 0x96b   :  { %v858_v35 = vmul.f32 %v856_v33, %v846_v25  ;;  %v857_v36 = vmul.f32 %v855_v34, %v849_v29 }
 0x96d   :  { %v860_v37 = vadd.f32 %v858_v35, %v846_v25  ;;  %v859_v38 = vmul.f32 %v857_v36, %v849_v29 }
 0x96f   :  { %v862_v39 = vmul.f32 0.7978846, %v860_v37  ;;  %v861_v40 = vadd.f32 %v859_v38, %v849_v29 }
 0x971   :  { %2396 = vtanh.f32 %v862_v39  ;;  %v863_v42 = vmul.f32 0.7978846, %v861_v40 }
 0x973   :  { %2398 = vtanh.f32 %v863_v42 }
 0x97b   :  { %v2397_v43 = vpop.eup %2396 }
 0x97c   :  { %v866_v44 = vadd.f32 1.0, %v2397_v43 }
 0x97d   :  { %v2399_v46 = vpop.eup %2398 }
 0x97e   :  { %v867_v49 = vadd.f32 1.0, %v2399_v46  ;;  %v868_v50 = vmul.f32 %v866_v44, %v852_v47 }
 0x980   :  { %v869_v51 = vmul.f32 %v867_v49, %v853_v48 }
 0x982   :  { %v870_v52 = vpack.c.bf16 %v869_v51, %v868_v50 }
 0x984   :  { %2218 = vmatmul.mubr.msk.bf16.vlgmr.msra.gmra.mrb[20].mxu1 %vm910_vm5, %v870_v52 }
 0x985   :  { %2237 = vmatprep.mubr.msk.bf16.mxu1 %vm2457_vm1, %v2456_v15 }
 0xa57   :  { %v948_v45 = vpop.f32.mrb[20].mxu1 }
 0xa58   :  { %v949_v54 = vadd.f32 %v2004_v55, %v948_v45  ;;  %v2219_v56 = vpop.f32.mrb[21].mxu1 }
 0xa59   :  { %v951_v57 = vpop.f32.mrb[22].mxu1 }
 0xa5a   :  { %v952_v58 = vadd.f32 %v2004_v55, %v951_v57  ;;  %v2220_v59 = vpop.f32.mrb[23].mxu1  ;;  %v955_v53 = vadd.f32 %v949_v54, %v782_v16 }
 0xa5c   :  { %v959_v41 = vsel %vm65_vm0, %v955_v53, 0.0  ;;  %v956_v60 = vadd.f32 %v952_v58, %v783_v17 }
 0xa5d   :  { %960 = vadd.xlane.f32.xlu1 %v959_v41 }
 0xa5e   :  { %v962_v61 = vsel %vm65_vm0, %v956_v60, 0.0 }
 0xa5f   :  { %963 = vadd.xlane.f32.xlu0 %v962_v61 }
 0xaea   :  { %v961_v31 = vpop.xlane.xlu1 %960 }
 0xaeb   :  { %v965_v32 = vmul.f32 0.03125, %v961_v31 }
 0xaec   :  { %v964_v62 = vpop.xlane.xlu0 %963 }
 0xaed   :  { %v967_v63 = vsub.f32 %v955_v53, %v965_v32  ;;  %v966_v0 = vmul.f32 0.03125, %v964_v62 }
 0xaef   :  { %v968_v1 = vsub.f32 %v956_v60, %v966_v0  ;;  %v969_v2 = vmul.f32 %v967_v63, %v967_v63 }
 0xaf1   :  { %v971_v4 = vsel %vm65_vm0, %v969_v2, 0.0  ;;  %v970_v5 = vmul.f32 %v968_v1, %v968_v1 }
 0xaf2   :  { %972 = vadd.xlane.f32.xlu1 %v971_v4 }
 0xaf3   :  { %v974_v6 = vsel %vm65_vm0, %v970_v5, 0.0 }
 0xaf4   :  { %975 = vadd.xlane.f32.xlu0 %v974_v6 }
 0xb7f   :  { %v973_v10 = vpop.xlane.xlu1 %972 }
 0xb80   :  { %v977_v11 = vmul.f32 0.03125, %v973_v10 }
 0xb81   :  { %v976_v12 = vpop.xlane.xlu0 %975 }
 0xb82   :  { %v979_v13 = vadd.f32 1e-12, %v977_v11  ;;  %v978_v14 = vmul.f32 0.03125, %v976_v12 }
 0xb84   :  { %2400 = vrsqrt.f32 %v979_v13  ;;  %v980_v16 = vadd.f32 1e-12, %v978_v14 }
 0xb86   :  { %2402 = vrsqrt.f32 %v980_v16 }
 0xb8e   :  { %v2401_v17 = vpop.eup %2400 }
 0xb8f   :  { %v983_v19 = vmul.f32 %v2401_v17, %v967_v63 }
 0xb90   :  { %v2403_v20 = vpop.eup %2402 }
 0xb91   :  { %v991_v21 = vmul.f32 %v2010_v18, %v983_v19  ;;  %v984_v22 = vmul.f32 %v2403_v20, %v968_v1 }
 0xb93   :  { %v992_v24 = vmul.f32 %v2010_v18, %v984_v22  ;;  %v2771_v25 = vadd.f32 %v2011_v23, %v991_v21 }
 0xb95   :  { %v2773_v26 = vadd.f32 %v2011_v23, %v992_v24 }
 0xb97   :  { %v1001_v27 = vpack.c.bf16 %v2773_v26, %v2771_v25 }
 0xb99   :  { %2226 = vmatmul.mubr.msk.bf16.vlgmr.msra.gmra.mrb[24].mxu0 %vm65_vm0, %v1001_v27 }
 0xb9a   :  { %2231 = vmatprep.mubr.msk.bf16.mxu0 %vm2457_vm1, %v2456_v15 }
 0xc6c   :  { %v1064_v29 = vpop.f32.mrb[24].mxu0 }
 0xc6d   :  { %v1065_v30 = vadd.f32 %v2017_v28, %v1064_v29  ;;  %v2227_v33 = vpop.f32.mrb[25].mxu0 }
 0xc6e   :  { %v1067_v34 = vpop.f32.mrb[26].mxu0 }
 0xc6f   :  { %v1068_v35 = vadd.f32 %v2017_v28, %v1067_v34  ;;  %v2228_v36 = vpop.f32.mrb[27].mxu0  ;;  %v1093_v37 = vpack.c.bf16 %v1065_v30, %v1065_v30  ;;  %v1071_v38 = vmul.f32 0.25, %v1065_v30 }
 0xc71   :  { %v1072_v39 = vmul.f32 0.25, %v1068_v35  ;;  %1098 = vrot.lane.b32.xlu0 %v1093_v37, %s2458_s3  ;;  %v2335_v40 = vpack.i.bf16 %v1068_v35, %v1065_v30  ;;  %v2786_v43 = vpack.c.bf16 %v1068_v35, %v1068_v35  ;;  %v1081_v52 = vpack.c.bf16 %v1071_v38, %v1071_v38 }
 0xc73   :  { %2336 = vrot.lane.b32.xlu1 %v2335_v40, %s2459_s28  ;;  %v2340_v42 = vpack.i.bf16 %v1072_v39, %v1071_v38  ;;  %v1082_v54 = vpack.c.bf16 %v1072_v39, %v1072_v39 }
 0xc75   :  { %2341 = vrot.lane.b32.xlu0 %v2340_v42, %s2459_s28 }
 0xc77   :  { %1147 = vrot.lane.b32.xlu1 %v2786_v43, %s2458_s3 }
 0xce3   :  { %v1099_v44 = vpop.permute.xlu0 %1098 }
 0xce4   :  { %v1104_v46 = vsel %vm208_vm2, %v1099_v44, 0 }
 0xce5   :  { %2230 = vmatpush3.bf16.xpose.msra.mxu0 %v1104_v46  ;;  %v2337_v47 = vpop.permute.xlu1 %2336 }
 0xce6   :  { %v2338_v48 = vunpack.i.l.bf16 %v2337_v47  ;;  %2241 = vmatprep.subr.bf16.mxu0 %v2456_v15  ;;  %v2339_v49 = vunpack.i.h.bf16 %v2337_v47 }
 0xce7   :  { %v2342_v56 = vpop.permute.xlu0 %2341 }
 0xce8   :  { %v2792_v50 = vpack.c.bf16 %v2338_v48, %v2338_v48  ;;  %v2797_v45 = vpack.c.bf16 %v2339_v49, %v2339_v49  ;;  %v2343_v59 = vunpack.i.l.bf16 %v2342_v56  ;;  %v2344_v60 = vunpack.i.h.bf16 %v2342_v56 }
 0xce9   :  { %v1148_v51 = vpop.permute.xlu1 %1147 }
 0xcea   :  { %v1153_v55 = vsel %vm208_vm2, %v1148_v51, 0  ;;  %1196 = vrot.lane.b32.xlu1 %v2792_v50, %s2458_s3  ;;  %v1083_v61 = vpack.c.bf16 %v2343_v59, %v2343_v59  ;;  %v1084_v31 = vpack.c.bf16 %v2344_v60, %v2344_v60 }
 0xceb   :  { %2236 = vmatpush3.bf16.xpose.msra.mxu1 %v1153_v55 }
 0xcec   :  { %2232 = vmatmul.mubr.msk.bf16.vlgmr.msra.gmra.mrb[28].mxu0 %vm208_vm2, %v1081_v52  ;;  %2247 = vmatprep.subr.bf16.mxu1 %v2456_v15 }
 0xced   :  { %2243 = vmatprep.mubr.msk.bf16.mxu0 %vm2457_vm1, %v2456_v15 }
 0xcee   :  { %1245 = vrot.lane.b32.xlu1 %v2797_v45, %s2458_s3 }
 0xcf2   :  { %2238 = vmatmul.mubr.msk.bf16.vlgmr.msra.gmra.mrb[24].mxu1 %vm208_vm2, %v1082_v54 }
 0xcf3   :  { %2249 = vmatprep.mubr.msk.bf16.mxu1 %vm2457_vm1, %v2456_v15 }
 0xd5c   :  { %v1197_v57 = vpop.permute.xlu1 %1196 }
 0xd5d   :  { %v1202_v58 = vsel %vm208_vm2, %v1197_v57, 0 }
 0xd5e   :  { %2242 = vmatpush3.bf16.xpose.msra.mxu0 %v1202_v58 }
 0xd5f   :  { %2253 = vmatprep.subr.bf16.mxu0 %v2456_v15 }
 0xd60   :  { %v1246_v53 = vpop.permute.xlu1 %1245 }
 0xd61   :  { %v1251_v41 = vsel %vm208_vm2, %v1246_v53, 0 }
 0xd62   :  { %2248 = vmatpush3.bf16.xpose.msra.mxu1 %v1251_v41 }
 0xd63   :  { %2259 = vmatprep.subr.bf16.mxu1 %v2456_v15 }
 0xd65   :  { %2244 = vmatmul.mubr.msk.bf16.vlgmr.msra.gmra.mrb[32].mxu0 %vm208_vm2, %v1083_v61 }
 0xd66   :  { %2255 = vmatprep.mubr.msk.bf16.mxu0 %vm2457_vm1, %v2456_v15 }
 0xd69   :  { %2250 = vmatmul.mubr.msk.bf16.vlgmr.msra.gmra.mrb[28].mxu1 %vm208_vm2, %v1084_v31 }
 0xd6a   :  { %2261 = vmatprep.mubr.msk.bf16.mxu1 %vm2457_vm1, %v2456_v15 }
 0xdbf   :  { %v1140_v32 = vpop.f32.mrb[28].mxu0 }
 0xdc0   :  { %v1293_v62 = vadd.f32 %v2641_v3, %v1140_v32  ;;  %v2233_v63 = vpop.f32.mrb[29].mxu0 }
 0xdc1   :  { %v1143_v0 = vpop.f32.mrb[30].mxu0 }
 0xdc2   :  { %v2234_v1 = vpop.f32.mrb[31].mxu0  ;;  %v1297_v2 = vsel %vm418_vm3, %v1293_v62, -inf }
 0xdc3   :  { %1298 = vmax.xlane.f32.xlu1 %v1297_v2 }
 0xdc5   :  { %v1189_v4 = vpop.f32.mrb[24].mxu1 }
 0xdc6   :  { %v1294_v5 = vadd.f32 %v2647_v8, %v1189_v4  ;;  %v2239_v6 = vpop.f32.mrb[25].mxu1 }
 0xdc7   :  { %v1192_v7 = vpop.f32.mrb[26].mxu1 }
 0xdc8   :  { %v2240_v9 = vpop.f32.mrb[27].mxu1  ;;  %v1300_v10 = vsel %vm418_vm3, %v1294_v5, -inf  ;;  %v2362_v7 = vld [vmem:[%s2958_s6 + $0x10] sm:$0xff]  }
 0xdc9   :  { %1301 = vmax.xlane.f32.xlu0 %v1300_v10 }
 0xdd4   :  { %1345 = vrot.lane.b32.xlu1 %v1093_v37, %s2460_s20 }
 0xe38   :  { %v1238_v11 = vpop.f32.mrb[32].mxu0 }
 0xe39   :  { %v1295_v12 = vadd.f32 %v2641_v3, %v1238_v11  ;;  %v2245_v13 = vpop.f32.mrb[33].mxu0  ;;  %v2363_v11 = vld [vmem:[%s2958_s6 + $0x18] sm:$0xff]  }
 0xe3a   :  { %v1241_v14 = vpop.f32.mrb[34].mxu0 }
 0xe3b   :  { %v2246_v16 = vpop.f32.mrb[35].mxu0  ;;  %v1303_v17 = vsel %vm418_vm3, %v1295_v12, -inf }
 0xe3c   :  { %v1287_v18 = vpop.f32.mrb[28].mxu1  ;;  %1304 = vmax.xlane.f32.xlu0 %v1303_v17 }
 0xe3d   :  { %v1296_v19 = vadd.f32 %v2647_v8, %v1287_v18  ;;  %v2251_v20 = vpop.f32.mrb[29].mxu1 }
 0xe3e   :  { %v1290_v21 = vpop.f32.mrb[30].mxu1 }
 0xe3f   :  { %v2252_v22 = vpop.f32.mrb[31].mxu1  ;;  %v1306_v23 = vsel %vm418_vm3, %v1296_v19, -inf }
 0xe40   :  { %1307 = vmax.xlane.f32.xlu0 %v1306_v23 }
 0xe50   :  { %v1299_v24 = vpop.xlane.xlu1 %1298 }
 0xe51   :  { %v1309_v27 = vsub.f32 %v1293_v62, %v1299_v24 }
 0xe53   :  { %v1313_v28 = vmul.f32 1.442695, %v1309_v27 }
 0xe54   :  { %v1346_v29 = vpop.permute.xlu1 %1345 }
 0xe55   :  { %2404 = vpow2.f32 %v1313_v28  ;;  %v1351_v3 = vsel %vm472_vm4, %v1346_v29, 0 }
 0xe56   :  { %v1302_v30 = vpop.xlane.xlu0 %1301  ;;  %2254 = vmatpush3.bf16.msra.mxu0 %v1351_v3 }
 0xe57   :  { %v1310_v33 = vsub.f32 %v1294_v5, %v1302_v30  ;;  %2265 = vmatprep.subr.bf16.mxu0 %v2456_v15 }
 0xe59   :  { %v1315_v34 = vmul.f32 1.442695, %v1310_v33 }
 0xe5b   :  { %2406 = vpow2.f32 %v1315_v34 }
 0xe5f   :  { %v2405_v8 = vpop.eup %2404 }
 0xe60   :  { %v1321_v35 = vsel %vm418_vm3, %v2405_v8, 0.0 }
 0xe61   :  { %1322 = vadd.xlane.f32.xlu1 %v1321_v35 }
 0xe65   :  { %v2407_v36 = vpop.eup %2406 }
 0xe66   :  { %v1324_v37 = vsel %vm418_vm3, %v2407_v36, 0.0 }
 0xe67   :  { %1325 = vadd.xlane.f32.xlu0 %v1324_v37 }
 0xec9   :  { %v1305_v38 = vpop.xlane.xlu0 %1304 }
 0xeca   :  { %v1311_v39 = vsub.f32 %v1295_v12, %v1305_v38 }
 0xecc   :  { %v1317_v40 = vmul.f32 1.442695, %v1311_v39 }
 0xecd   :  { %v1308_v42 = vpop.xlane.xlu0 %1307 }
 0xece   :  { %2408 = vpow2.f32 %v1317_v40  ;;  %v1312_v44 = vsub.f32 %v1296_v19, %v1308_v42 }
 0xed0   :  { %v1319_v46 = vmul.f32 1.442695, %v1312_v44 }
 0xed2   :  { %2410 = vpow2.f32 %v1319_v46 }
 0xed8   :  { %v2409_v47 = vpop.eup %2408 }
 0xed9   :  { %v1327_v48 = vsel %vm418_vm3, %v2409_v47, 0.0 }
 0xeda   :  { %1328 = vadd.xlane.f32.xlu1 %v1327_v48 }
 0xedc   :  { %v2411_v49 = vpop.eup %2410 }
 0xedd   :  { %v1330_v51 = vsel %vm418_vm3, %v2411_v49, 0.0 }
 0xede   :  { %1331 = vadd.xlane.f32.xlu0 %v1330_v51 }
 0xeeb   :  { %1441 = vrot.lane.b32.xlu1 %v2792_v50, %s2460_s20 }
 0xeee   :  { %v1323_v52 = vpop.xlane.xlu1 %1322 }
 0xeef   :  { %2412 = vrcp.f32 %v1323_v52  ;;  %1489 = vrot.lane.b32.xlu1 %v2797_v45, %s2460_s20 }
 0xef4   :  { %1393 = vrot.lane.b32.xlu0 %v2786_v43, %s2460_s20  ;;  %v1326_v57 = vpop.xlane.xlu0 %1325 }
 0xef5   :  { %2414 = vrcp.f32 %v1326_v57 }
 0xef9   :  { %v2413_v55 = vpop.eup %2412 }
 0xefa   :  { %v1337_v54 = vmul.f32 %v2413_v55, %v2405_v8  ;;  %v2034_v8 = vld [vmem:[%s2959_s7 + $0x1] ss:$0 sm:$0xff] }
 0xefc   :  { %v1341_v56 = vpack.c.bf16 %v1337_v54, %v1337_v54 }
 0xefe   :  { %2256 = vmatmul.mubr.msk.bf16.vlgmr.msra.gmra.mrb[36].mxu0 %vm418_vm3, %v1341_v56 }
 0xeff   :  { %2267 = vmatprep.mubr.msk.bf16.mxu0 %vm2457_vm1, %v2456_v15  ;;  %v2415_v50 = vpop.eup %2414 }
 0xf00   :  { %v1338_v43 = vmul.f32 %v2415_v50, %v2407_v36  ;;  %v2365_v50 = vld [vmem:[%s2962_s10 + $0x18] sm:$0xff]  }
 0xf02   :  { %v1342_v32 = vpack.c.bf16 %v1338_v43, %v1338_v43 }
 0xf67   :  { %v1329_v58 = vpop.xlane.xlu1 %1328 }
 0xf68   :  { %2416 = vrcp.f32 %v1329_v58 }
 0xf6b   :  { %v1442_v59 = vpop.permute.xlu1 %1441  ;;  %v1332_v53 = vpop.xlane.xlu0 %1331 }
 0xf6c   :  { %v1447_v45 = vsel %vm472_vm4, %v1442_v59, 0  ;;  %2418 = vrcp.f32 %v1332_v53 }
 0xf6d   :  { %2266 = vmatpush3.bf16.msra.mxu0 %v1447_v45 }
 0xf6e   :  { %2277 = vmatprep.subr.bf16.mxu0 %v2456_v15 }
 0xf6f   :  { %v1394_v41 = vpop.permute.xlu0 %1393  ;;  %v1490_v61 = vpop.permute.xlu1 %1489 }
 0xf70   :  { %v1399_v60 = vsel %vm472_vm4, %v1394_v41, 0  ;;  %v1495_v63 = vsel %vm472_vm4, %v1490_v61, 0 }
 0xf71   :  { %2260 = vmatpush3.bf16.msra.mxu1 %v1399_v60 }
 0xf72   :  { %v2417_v31 = vpop.eup %2416  ;;  %2271 = vmatprep.subr.bf16.mxu1 %v2456_v15 }
 0xf73   :  { %v1339_v62 = vmul.f32 %v2417_v31, %v2409_v47 }
 0xf74   :  { %2262 = vmatmul.mubr.msk.bf16.vlgmr.msra.gmra.mrb[32].mxu1 %vm418_vm3, %v1342_v32  ;;  %v2040_v32 = vld [vmem:[%s2960_s8 + $0x1] ss:$0 sm:$0xff] }
 0xf75   :  { %2272 = vmatpush3.bf16.msra.mxu1 %v1495_v63  ;;  %v1343_v0 = vpack.c.bf16 %v1339_v62, %v1339_v62  ;;  %2273 = vmatprep.mubr.msk.bf16.mxu1 %vm2457_vm1, %v2456_v15 }
 0xf76   :  { %v2419_v1 = vpop.eup %2418  ;;  %2285 = vmatprep.subr.bf16.mxu1 %v2456_v15 }
 0xf77   :  { %v1340_v2 = vmul.f32 %v2419_v1, %v2411_v49  ;;  %2268 = vmatmul.mubr.msk.bf16.vlgmr.msra.gmra.mrb[40].mxu0 %vm418_vm3, %v1343_v0  ;;  %v2041_v1 = vld [vmem:[%s2961_s9 + $0x1] ss:$0 sm:$0xff] }
 0xf78   :  { %2281 = vmatprep.mubr.msk.bf16.mxu0 %vm2457_vm1, %v2456_v15  ;;  %2278 = vmatpush3.bf16.msra.mxu0 %v2362_v7  ;;  %v2366_v7 = vld [vmem:[%s2964_s12 + $0x20] sm:$0xff]  }
 0xf79   :  { %v1344_v4 = vpack.c.bf16 %v1340_v2, %v1340_v2  ;;  %2279 = vmatprep.subr.bf16.mxu0 %v2456_v15 }
 0xf7c   :  { %2274 = vmatmul.mubr.msk.bf16.vlgmr.msra.gmra.mrb[36].mxu1 %vm418_vm3, %v1344_v4  ;;  %2280 = vmatpush3.bf16.msra.mxu0 %v2363_v11  ;;  %v2369_v11 = vld [vmem:[%s2964_s12 + $0x38] sm:$0xff]  }
 0xf7d   :  { %2289 = vmatprep.mubr.msk.bf16.mxu1 %vm2457_vm1, %v2456_v15  ;;  %2293 = vmatprep.subr.bf16.mxu0 %v2456_v15 }
 0xfd1   :  { %v1387_v5 = vpop.f32.mrb[36].mxu0 }
 0xfd2   :  { %v2257_v6 = vpop.f32.mrb[37].mxu0 }
 0xfd3   :  { %v1390_v9 = vpop.f32.mrb[38].mxu0 }
 0xfd4   :  { %v2258_v10 = vpop.f32.mrb[39].mxu0  ;;  %v2367_v9 = vld [vmem:[%s2964_s12 + $0x28] sm:$0xff]  }
 0xfd5   :  { %v2368_v10 = vld [vmem:[%s2964_s12 + $0x30] sm:$0xff]  }
0x1047   :  { %v1435_v12 = vpop.f32.mrb[32].mxu1 }
0x1048   :  { %v2263_v13 = vpop.f32.mrb[33].mxu1 }
0x1049   :  { %v1438_v14 = vpop.f32.mrb[34].mxu1 }
0x104a   :  { %v2264_v16 = vpop.f32.mrb[35].mxu1  ;;  %v1483_v17 = vpop.f32.mrb[40].mxu0 }
0x104b   :  { %v2269_v18 = vpop.f32.mrb[41].mxu0 }
0x104c   :  { %v1486_v19 = vpop.f32.mrb[42].mxu0 }
0x104d   :  { %v2270_v20 = vpop.f32.mrb[43].mxu0 }
0x104f   :  { %v1531_v21 = vpop.f32.mrb[36].mxu1 }
0x1050   :  { %v2345_v22 = vpack.i.bf16 %v1531_v21, %v1483_v17  ;;  %v2275_v23 = vpop.f32.mrb[37].mxu1 }
0x1051   :  { %v1534_v24 = vpop.f32.mrb[38].mxu1 }
0x1052   :  { %v2276_v27 = vpop.f32.mrb[39].mxu1  ;;  %2346 = vrot.lane.b32.xlu1 %v2345_v22, %s2461_s24 }
0x10c4   :  { %v2347_v28 = vpop.permute.xlu1 %2346 }
0x10c5   :  { %v2349_v29 = vunpack.i.h.bf16 %v2347_v28  ;;  %v2348_v3 = vunpack.i.l.bf16 %v2347_v28 }
0x10c7   :  { %v1546_v30 = vsel %vm208_vm2, %v1435_v12, %v2349_v29  ;;  %v1545_v33 = vsel %vm208_vm2, %v1387_v5, %v2348_v3  ;;  %v2047_v12 = vld [vmem:[%s2963_s11 + $0x1] ss:$0 sm:$0xff] }
0x10c8   :  { %v1547_v34 = vpack.c.bf16 %v1546_v30, %v1545_v33 }
0x10ca   :  { %2282 = vmatmul.mubr.msk.bf16.vlgmr.msra.gmra.mrb[44].mxu0 %vm65_vm0, %v1547_v34 }
0x10cb   :  { %2301 = vmatprep.mubr.msk.bf16.mxu0 %vm2457_vm1, %v2456_v15  ;;  %2294 = vmatpush3.bf16.msra.mxu0 %v2366_v7 }
0x10cc   :  { %2295 = vmatprep.subr.bf16.mxu0 %v2456_v15 }
0x10cf   :  { %2296 = vmatpush3.bf16.msra.mxu0 %v2367_v9 }
0x10d0   :  { %2297 = vmatprep.subr.bf16.mxu0 %v2456_v15 }
0x10d3   :  { %2298 = vmatpush3.bf16.msra.mxu0 %v2368_v10 }
0x10d4   :  { %2299 = vmatprep.subr.bf16.mxu0 %v2456_v15 }
0x10d7   :  { %2300 = vmatpush3.bf16.msra.mxu0 %v2369_v11 }
0x119d   :  { %v1610_v35 = vpop.f32.mrb[44].mxu0 }
0x119e   :  { %v1611_v36 = vadd.f32 %v2034_v8, %v1610_v35  ;;  %v2283_v37 = vpop.f32.mrb[45].mxu0 }
0x119f   :  { %v1613_v38 = vpop.f32.mrb[46].mxu0 }
0x11a0   :  { %v1614_v39 = vadd.f32 %v2034_v8, %v1613_v38  ;;  %v2284_v40 = vpop.f32.mrb[47].mxu0  ;;  %v1617_v42 = vadd.f32 %v1611_v36, %v2771_v25 }
0x11a2   :  { %v1623_v44 = vsel %vm65_vm0, %v1617_v42, 0.0  ;;  %v1618_v46 = vadd.f32 %v1614_v39, %v2773_v26  ;;  %v2364_v26 = vld [vmem:[%s2962_s10 + $0x10] sm:$0xff]  }
0x11a3   :  { %1624 = vadd.xlane.f32.xlu0 %v1623_v44  ;;  %2286 = vmatpush3.bf16.msra.mxu1 %v2364_v26 }
0x11a4   :  { %v1626_v47 = vsel %vm65_vm0, %v1618_v46, 0.0  ;;  %2287 = vmatprep.subr.bf16.mxu1 %v2456_v15 }
0x11a5   :  { %1627 = vadd.xlane.f32.xlu1 %v1626_v47 }
0x11a7   :  { %2288 = vmatpush3.bf16.msra.mxu1 %v2365_v50 }
0x11a8   :  { %2305 = vmatprep.subr.bf16.mxu1 %v2456_v15 }
0x1230   :  { %v1625_v48 = vpop.xlane.xlu0 %1624 }
0x1231   :  { %v1629_v49 = vmul.f32 0.03125, %v1625_v48 }
0x1232   :  { %v1628_v51 = vpop.xlane.xlu1 %1627 }
0x1233   :  { %v1631_v52 = vsub.f32 %v1617_v42, %v1629_v49  ;;  %v1630_v55 = vmul.f32 0.03125, %v1628_v51  ;;  %v2060_v42 = vld [vmem:[%s2965_s13 + $0x1] ss:$0 sm:$0xff] }
0x1235   :  { %v1632_v54 = vsub.f32 %v1618_v46, %v1630_v55  ;;  %v1633_v56 = vmul.f32 %v1631_v52, %v1631_v52 }
0x1237   :  { %v1635_v57 = vsel %vm65_vm0, %v1633_v56, 0.0  ;;  %v1634_v58 = vmul.f32 %v1632_v54, %v1632_v54 }
0x1238   :  { %1636 = vadd.xlane.f32.xlu0 %v1635_v57 }
0x1239   :  { %v1638_v25 = vsel %vm65_vm0, %v1634_v58, 0.0 }
0x123c   :  { %1639 = vadd.xlane.f32.xlu0 %v1638_v25 }
0x12c5   :  { %v1637_v59 = vpop.xlane.xlu0 %1636 }
0x12c6   :  { %v1641_v53 = vmul.f32 0.03125, %v1637_v59 }
0x12c8   :  { %v1643_v45 = vadd.f32 1e-12, %v1641_v53 }
0x12c9   :  { %v1640_v43 = vpop.xlane.xlu0 %1639 }
0x12ca   :  { %2420 = vrsqrt.f32 %v1643_v45  ;;  %v1642_v41 = vmul.f32 0.03125, %v1640_v43 }
0x12cc   :  { %v1644_v60 = vadd.f32 1e-12, %v1642_v41 }
0x12ce   :  { %2422 = vrsqrt.f32 %v1644_v60  ;;  %v2370_v60 = vld [vmem:[%s2968_s16] sm:$0xff]  }
0x12d4   :  { %v2421_v61 = vpop.eup %2420 }
0x12d5   :  { %v1647_v31 = vmul.f32 %v2421_v61, %v1631_v52  ;;  %v2371_v61 = vld [vmem:[%s2968_s16 + $0x8] sm:$0xff]  }
0x12d7   :  { %v1655_v63 = vmul.f32 %v2040_v32, %v1647_v31 }
0x12d8   :  { %v2423_v62 = vpop.eup %2422 }
0x12d9   :  { %v1648_v0 = vmul.f32 %v2423_v62, %v1632_v54  ;;  %v1663_v4 = vadd.f32 %v2041_v1, %v1655_v63 }
0x12db   :  { %v1656_v2 = vmul.f32 %v2040_v32, %v1648_v0 }
0x12dd   :  { %v1664_v5 = vadd.f32 %v2041_v1, %v1656_v2 }
0x12df   :  { %v1665_v6 = vpack.c.bf16 %v1664_v5, %v1663_v4 }
0x12e1   :  { %2290 = vmatmul.mubr.msk.bf16.vlgmr.msra.gmra.mrb[40].mxu1 %vm65_vm0, %v1665_v6 }
0x12e2   :  { %2309 = vmatprep.mubr.msk.bf16.mxu1 %vm2457_vm1, %v2456_v15  ;;  %2306 = vmatpush3.bf16.msra.mxu1 %v2370_v60 }
0x12e3   :  { %2307 = vmatprep.subr.bf16.mxu1 %v2456_v15  ;;  %v2069_v15 = vld [vmem:[%s2967_s15 + $0x1] ss:$0 sm:$0xff]  ;;  %s2462_s15 = smov [#allocation2]  }
0x12e4   :  { %s1970_s21 = sshll.u32 %s2462_s15, 4  ;;  %s1971_s21 = int_to_ptr.vmem [resolvable:$true] %s1970_s21 }
0x12e5   :  { %s2432_s22 = scalar_lea.vmem %s1971_s21, 32  ;;  %p2437_p1 = scmp.lt.s32.totalorder %s1971_s21, %s1971_s21 }
0x12e6   :  { %2308 = vmatpush3.bf16.msra.mxu1 %v2371_v61  ;;  %p2433_p0 = scmp.ne.s32.totalorder %s1971_s21, %s2432_s22  ;;  %p2438_p2 = scmp.lt.s32.totalorder %s2432_s22, %s2432_s22 }
0x12e8   :  { %p2439_p3 = por %p2438_p2, %p2437_p1 }
0x12ea   :  { %p2440_p4 = pnand %p2439_p3, %p2433_p0 }
0x13b4   :  { %v1728_v13 = vpop.f32.mrb[40].mxu1 }
0x13b5   :  { %v1729_v14 = vadd.f32 %v2047_v12, %v1728_v13  ;;  %v2291_v16 = vpop.f32.mrb[41].mxu1 }
0x13b6   :  { %v1731_v17 = vpop.f32.mrb[42].mxu1 }
0x13b7   :  { %v1737_v18 = vmul.f32 0.044715, %v1729_v14  ;;  %v1732_v19 = vadd.f32 %v2047_v12, %v1731_v17  ;;  %v2292_v20 = vpop.f32.mrb[43].mxu1  ;;  %v1735_v35 = vmul.f32 0.5, %v1729_v14 }
0x13b9   :  { %v1739_v21 = vmul.f32 %v1737_v18, %v1729_v14  ;;  %v1738_v22 = vmul.f32 0.044715, %v1732_v19  ;;  %v1736_v36 = vmul.f32 0.5, %v1732_v19 }
0x13bb   :  { %v1741_v23 = vmul.f32 %v1739_v21, %v1729_v14  ;;  %v1740_v24 = vmul.f32 %v1738_v22, %v1732_v19  ;;  %v2070_v21 = vld [vmem:[%s2969_s17] ss:$0 sm:$0xff] }
0x13bd   :  { %v1743_v27 = vadd.f32 %v1741_v23, %v1729_v14  ;;  %v1742_v28 = vmul.f32 %v1740_v24, %v1732_v19 }
0x13bf   :  { %v1745_v29 = vmul.f32 0.7978846, %v1743_v27  ;;  %v1744_v3 = vadd.f32 %v1742_v28, %v1732_v19 }
0x13c1   :  { %2424 = vtanh.f32 %v1745_v29  ;;  %v1746_v30 = vmul.f32 0.7978846, %v1744_v3 }
0x13c3   :  { %2426 = vtanh.f32 %v1746_v30 }
0x13cb   :  { %v2425_v33 = vpop.eup %2424 }
0x13cc   :  { %v1749_v34 = vadd.f32 1.0, %v2425_v33 }
0x13cd   :  { %v2427_v8 = vpop.eup %2426 }
0x13ce   :  { %v1750_v37 = vadd.f32 1.0, %v2427_v8  ;;  %v1751_v38 = vmul.f32 %v1749_v34, %v1735_v35 }
0x13d0   :  { %v1752_v39 = vmul.f32 %v1750_v37, %v1736_v36 }
0x13d2   :  { %v1753_v40 = vpack.c.bf16 %v1752_v39, %v1751_v38 }
0x13d4   :  { %2302 = vmatmul.mubr.msk.bf16.vlgmr.msra.gmra.mrb[48].mxu0 %vm910_vm5, %v1753_v40 }
0x14a7   :  { %v1832_v44 = vpop.f32.mrb[48].mxu0 }
0x14a8   :  { %v1833_v46 = vadd.f32 %v2060_v42, %v1832_v44  ;;  %v2303_v47 = vpop.f32.mrb[49].mxu0 }
0x14a9   :  { %v1835_v48 = vpop.f32.mrb[50].mxu0 }
0x14aa   :  { %v1836_v49 = vadd.f32 %v2060_v42, %v1835_v48  ;;  %v2304_v51 = vpop.f32.mrb[51].mxu0  ;;  %v1839_v52 = vadd.f32 %v1833_v46, %v1663_v4  ;;  %v2068_v4 = vld [vmem:[%s2966_s14 + $0x1] ss:$0 sm:$0xff] }
0x14ac   :  { %v1845_v55 = vsel %vm65_vm0, %v1839_v52, 0.0  ;;  %v1840_v54 = vadd.f32 %v1836_v49, %v1664_v5 }
0x14ad   :  { %1846 = vadd.xlane.f32.xlu1 %v1845_v55 }
0x14ae   :  { %v1848_v56 = vsel %vm65_vm0, %v1840_v54, 0.0 }
0x14af   :  { %1849 = vadd.xlane.f32.xlu0 %v1848_v56 }
0x153a   :  { %v1847_v57 = vpop.xlane.xlu1 %1846 }
0x153b   :  { %v1851_v58 = vmul.f32 0.03125, %v1847_v57 }
0x153c   :  { %v1850_v25 = vpop.xlane.xlu0 %1849 }
0x153d   :  { %v1853_v26 = vsub.f32 %v1839_v52, %v1851_v58  ;;  %v1852_v50 = vmul.f32 0.03125, %v1850_v25 }
0x153f   :  { %v1854_v59 = vsub.f32 %v1840_v54, %v1852_v50  ;;  %v1855_v53 = vmul.f32 %v1853_v26, %v1853_v26 }
0x1541   :  { %v1857_v45 = vsel %vm65_vm0, %v1855_v53, 0.0  ;;  %v1856_v43 = vmul.f32 %v1854_v59, %v1854_v59 }
0x1542   :  { %1858 = vadd.xlane.f32.xlu1 %v1857_v45 }
0x1543   :  { %v1860_v41 = vsel %vm65_vm0, %v1856_v43, 0.0 }
0x1544   :  { %1861 = vadd.xlane.f32.xlu0 %v1860_v41 }
0x15cf   :  { %v1859_v31 = vpop.xlane.xlu1 %1858 }
0x15d0   :  { %v1863_v32 = vmul.f32 0.03125, %v1859_v31 }
0x15d1   :  { %v1862_v62 = vpop.xlane.xlu0 %1861 }
0x15d2   :  { %v1865_v63 = vadd.f32 1e-12, %v1863_v32  ;;  %v1864_v0 = vmul.f32 0.03125, %v1862_v62 }
0x15d4   :  { %2428 = vrsqrt.f32 %v1865_v63  ;;  %v1866_v1 = vadd.f32 1e-12, %v1864_v0 }
0x15d6   :  { %2430 = vrsqrt.f32 %v1866_v1 }
0x15de   :  { %v2429_v2 = vpop.eup %2428 }
0x15df   :  { %v1869_v5 = vmul.f32 %v2429_v2, %v1853_v26 }
0x15e0   :  { %v2431_v6 = vpop.eup %2430 }
0x15e1   :  { %v1877_v7 = vmul.f32 %v2068_v4, %v1869_v5  ;;  %v1870_v9 = vmul.f32 %v2431_v6, %v1854_v59 }
0x15e3   :  { %v1885_v10 = vadd.f32 %v2069_v15, %v1877_v7  ;;  %v1878_v11 = vmul.f32 %v2068_v4, %v1870_v9 }
0x15e5   :  { %v1886_v12 = vadd.f32 %v2069_v15, %v1878_v11  ;;  %v1887_v13 = vpack.c.bf16 %v1885_v10, %v1885_v10 }
0x15e7   :  { %v1888_v14 = vpack.c.bf16 %v1886_v12, %v1886_v12  ;;  %v1902_v17 = vunpack.c.l.b16 %v1887_v13 }
0x15e9   :  { %v1903_v16 = vunpack.c.l.b16 %v1888_v14 }
0x15eb   :  { %v1904_v18 = vrot.slane %v1903_v16, 7 }
0x15ed   :  { %v1906_v19 = vsel %vm1905_vm6, %v1904_v18, %v1902_v17 }
0x15ee   :  { %v1907_v20 = vpack.c.b16 %v1906_v19, %v1906_v19 }
0x15f0   :  { %2310 = vmatmul.mubr.msk.bf16.vlgmr.msra.gmra.mrb[44].mxu1 %vm65_vm0, %v1907_v20 }
0x16c3   :  { %v1957_v22 = vpop.f32.mrb[44].mxu1 }
0x16c4   :  { %v1958_v23 = vadd.f32 %v2070_v21, %v1957_v22  ;;  %v2311_v24 = vpop.f32.mrb[45].mxu1 }
0x16c5   :  { %v1960_v27 = vpop.f32.mrb[46].mxu1 }
0x16c6   :  { %1963 = vst [vmem:[#allocation2] sm:$0x3] %v1958_v23  ;;  %v2312_v28 = vpop.f32.mrb[47].mxu1 }
0x16c7   :  { %2443 = shalt.err (!%p2440_p4)
}
0x16c8   :  { %s2444_s17 = scalar_lea.hbm %s2970_s18, 32 }
0x16c9   :  { %p2445_p5 = scmp.ne.s32.totalorder %s2970_s18, %s2444_s17  ;;  %p2448_p6 = scmp.lt.u32.totalorder %s2444_s17, %s2970_s18 }
0x16cb   :  { %p2450_p7 = pnand %p2448_p6, %p2445_p5 }
0x16cd   :  { %2453 = shalt.err (!%p2450_p7)
}
0x16ce   :  { %1973 = dma.vmem_to_hbm [thread:$0]  %s1971_s21, 32, %s2970_s18, [#allocation3]  }
0x16cf   :  { %2454 = dma.done.wait [#allocation3], 32  }
0x16d0   :  { %2455 = vsyncadd [#allocation3], 4294967264 }
0x16d1   :  { %1977 = vsyncpa [#allocation3], 1 }

</bundles_post_ra>
